<compile_context>
chip_gen: v7x
topology: tpu7x:2x2x1
jax: 0.10.0
libtpu: 0.0.40
codegen_flags: <defaults>
</compile_context>

<pallas_src>
import jax
import jax.numpy as jnp
from jax.experimental import pallas as pl
from jax.experimental.pallas import tpu as pltpu


def primary_pp_kernel(enc_ref, pol_ref, pos_ref,
                      wkp_pol_ref, wkp_pos_ref, bkp_ref,
                      wqp_pol_ref, wqp_pos_ref, bqp_ref,
                      up_ref, vhp_enc_ref, vhap_enc_ref, vhap_pos_ref,
                      wd1_max_ref, wd1_sa_ref, wd1_sp_ref, bd1_ref,
                      wd2_ref, bd2_ref, out_ref):
    enc = enc_ref[...]                      # (TB, S, H)   f32
    pol = pol_ref[...]                      # (TB, S, DPOL)
    pos = pos_ref[...]                      # (TB, S, DPOS)
    TB, S, H = enc.shape
    DPOL = pol.shape[-1]
    DPOS = pos.shape[-1]
    NH = bkp_ref.shape[-1]                  # attention_p hidden dim (100)

    # ---- attention_p projections: 2-D matmuls on flattened (TB*S, .) slabs.
    #      cat(polar, position) is folded by splitting W_k / W_q columns. ----
    pol2 = pol.reshape(TB * S, DPOL)
    pos2 = pos.reshape(TB * S, DPOS)
    kx2 = (jnp.dot(pol2, wkp_pol_ref[...], preferred_element_type=jnp.float32)
           + jnp.dot(pos2, wkp_pos_ref[...], preferred_element_type=jnp.float32)
           + bkp_ref[...])
    qx2 = (jnp.dot(pol2, wqp_pol_ref[...], preferred_element_type=jnp.float32)
           + jnp.dot(pos2, wqp_pos_ref[...], preferred_element_type=jnp.float32)
           + bqp_ref[...])
    kx = kx2.reshape(TB, S, NH)
    qx = qx2.reshape(TB, S, NH)

    # ---- attention_p self-attention (dot_product score) ----
    sc = jnp.einsum('bqh,bkh->bqk', qx, kx,
                    preferred_element_type=jnp.float32)            # (TB,S,S)
    sc = sc - jnp.max(sc, axis=-1, keepdims=True)
    e_p = jnp.exp(sc)
    # exact reciprocal here: these probs feed two more contractions.
    attn_p = e_p * pl.reciprocal(jnp.sum(e_p, axis=-1, keepdims=True),
                                 approx=False)                     # (TB,S,S)

    # polar_att @ v_hp_pol  ==  attn_p @ (kx @ u_p)   (proj folded; its bias
    # is constant over the key axis and cancels under the hp softmax).
    up = jnp.broadcast_to(up_ref[...][None], (TB, 1, NH))
    g = jnp.einsum('bqh,bkh->bqk', up, kx,
                   preferred_element_type=jnp.float32)             # (TB,1,S)
    polar_logit = jnp.einsum('bqj,bkj->bqk', g, attn_p,
                             preferred_element_type=jnp.float32)   # (TB,1,S)

    # ---- attention_hp: logits = enc @ v_hp_enc + polar_logit (+ consts that
    #      cancel under softmax).  Normalization folded into sp (EUP recip). ----
    vhp = jnp.broadcast_to(vhp_enc_ref[...][None], (TB, 1, H))
    logit_hp = jnp.einsum('bqh,bkh->bqk', vhp, enc,
                          preferred_element_type=jnp.float32) + polar_logit
    logit_hp = logit_hp - jnp.max(logit_hp, axis=-1, keepdims=True)
    e_hp = jnp.exp(logit_hp)                                       # (TB,1,S)
    sp = (jnp.einsum('bqk,bkd->bqd', e_hp, enc,
                     preferred_element_type=jnp.float32)
          * pl.reciprocal(jnp.sum(e_hp, axis=-1, keepdims=True),
                          approx=True))                            # (TB,1,H)

    # ---- attention_hap: logits = enc @ v_hap_enc + pos @ v_hap_pos.
    #      (aspect_u term is constant over the key axis -> cancels.) ----
    vhae = jnp.broadcast_to(vhap_enc_ref[...][None], (TB, 1, H))
    vhap = jnp.broadcast_to(vhap_pos_ref[...][None], (TB, 1, DPOS))
    logit_hap = (jnp.einsum('bqh,bkh->bqk', vhae, enc,
                            preferred_element_type=jnp.float32)
                 + jnp.einsum('bqp,bkp->bqk', vhap, pos,
                              preferred_element_type=jnp.float32))
    logit_hap = logit_hap - jnp.max(logit_hap, axis=-1, keepdims=True)
    e_hap = jnp.exp(logit_hap)
    sa = (jnp.einsum('bqk,bkd->bqd', e_hap, enc,
                     preferred_element_type=jnp.float32)
          * pl.reciprocal(jnp.sum(e_hap, axis=-1, keepdims=True),
                          approx=True))                            # (TB,1,H)

    # ---- feature pooling + dense head (cat(s_max, sa, sp) folded by splitting
    #      the first dense weight column-wise) ----
    s_max = jnp.max(enc, axis=1)                                   # (TB,H)
    sa2 = sa.reshape(TB, H)
    sp2 = sp.reshape(TB, H)
    # TODO(synk): Dropout(p=0.5) in the dense head is identity at inference.
    h1 = jnp.tanh(jnp.dot(s_max, wd1_max_ref[...], preferred_element_type=jnp.float32)
                  + jnp.dot(sa2, wd1_sa_ref[...], preferred_element_type=jnp.float32)
                  + jnp.dot(sp2, wd1_sp_ref[...], preferred_element_type=jnp.float32)
                  + bd1_ref[...])                                  # (TB,H)
    out = jnp.dot(h1, wd2_ref[...], preferred_element_type=jnp.float32) + bd2_ref[...]
    out_ref[...] = out.astype(out_ref.dtype)                       # (TB,P_pad) lane-dense


def primary_pp_forward(params, encoder_out, position, polar, aspect, len_x):
    """Pallas implementation of PrimayPP.forward (eval mode).

    encoder_out (B,S,H), position (B,>=S,Pd), polar (B,>=S,50), aspect (B,1,E)
    -> (B, num_polar).  squeeze_embedding == trim to S = encoder_out.shape[1];
    no key masking (matches the reference module).
    """
    del len_x
    B, S, H = encoder_out.shape
    position = position[:, :S, :]
    polar = polar[:, :S, :]
    DPOL = polar.shape[-1]
    DPOS = position.shape[-1]
    NH = DPOL + DPOS                       # attention_p embed/hidden dim (=100)
    P = params["wd2"].shape[0]
    f32 = jnp.float32

    # ---------- batch-independent precompute (tiny, plain JAX glue) ----------
    # attention_hp: fold query path + W_k:  logits = hp @ v_hp (+ const).
    qx_hp = params["q_hp"] @ params["wq_hp"].T + params["bq_hp"]      # (1,D1)
    qw_hp = qx_hp @ params["w_hp_bl"]
    v_hp = qw_hp @ params["wk_hp"]                                    # (1,D1)
    v_hp_enc = v_hp[:, :H]                                            # (1,H)
    v_hp_pol = v_hp[:, H:]                                            # (1,NH)
    u_p = v_hp_pol @ params["wproj_p"]                                # (1,NH)

    # attention_hap: same folding; the aspect_u term is constant along the
    # key axis and cancels under softmax (verified vs reference_forward).
    qx_hap = params["q_hap"] @ params["wq_hap"].T + params["bq_hap"]
    qw_hap = qx_hap @ params["w_hap_bl"]
    v_hap = qw_hap @ params["wk_hap"]                                 # (1,D2)
    v_hap_enc = v_hap[:, :H]
    v_hap_pos = v_hap[:, H:H + DPOS]
    _ = aspect  # mathematically does not affect the output (see comment above)

    # attention_p weights split along cat(polar, position) -> no in-kernel concat.
    wkp_pol_t = params["wk_p"][:, :DPOL].T.astype(f32)                # (DPOL,NH)
    wkp_pos_t = params["wk_p"][:, DPOL:].T.astype(f32)                # (DPOS,NH)
    bkp = params["bk_p"].reshape(1, NH).astype(f32)
    wqp_pol_t = params["wq_p"][:, :DPOL].T.astype(f32)
    wqp_pos_t = params["wq_p"][:, DPOL:].T.astype(f32)
    bqp = params["bq_p"].reshape(1, NH).astype(f32)

    # dense head split along cat(s_max, sa, sp); pad outputs to 128 lanes.
    wd1 = params["wd1"]
    wd1_max_t = wd1[:, :H].T.astype(f32)
    wd1_sa_t = wd1[:, H:2 * H].T.astype(f32)
    wd1_sp_t = wd1[:, 2 * H:].T.astype(f32)
    bd1 = params["bd1"].reshape(1, H).astype(f32)
    P_pad = ((P + 127) // 128) * 128
    wd2_t = jnp.zeros((H, P_pad), f32).at[:, :P].set(params["wd2"].T)
    bd2 = jnp.zeros((1, P_pad), f32).at[:, :P].set(params["bd2"].reshape(1, P))

    # ---------- batch blocking ----------
    TB = B if B <= 64 else 64               # 64 is a multiple of 8 (sublane rule)
    B_pad = ((B + TB - 1) // TB) * TB
    if B_pad != B:
        pad3 = ((0, B_pad - B), (0, 0), (0, 0))
        encoder_out = jnp.pad(encoder_out, pad3)
        position = jnp.pad(position, pad3)
        polar = jnp.pad(polar, pad3)

    out = pl.pallas_call(
        primary_pp_kernel,
        out_shape=jax.ShapeDtypeStruct((B_pad, P_pad), f32),
        grid_spec=pltpu.PrefetchScalarGridSpec(
            num_scalar_prefetch=0,
            grid=(B_pad // TB,),
            in_specs=[
                pl.BlockSpec((TB, S, H), lambda b: (b, 0, 0)),       # encoder_out
                pl.BlockSpec((TB, S, DPOL), lambda b: (b, 0, 0)),    # polar
                pl.BlockSpec((TB, S, DPOS), lambda b: (b, 0, 0)),    # position
                pl.BlockSpec((DPOL, NH), lambda b: (0, 0)),          # Wk_p (polar cols)^T
                pl.BlockSpec((DPOS, NH), lambda b: (0, 0)),          # Wk_p (pos cols)^T
                pl.BlockSpec((1, NH), lambda b: (0, 0)),             # bk_p
                pl.BlockSpec((DPOL, NH), lambda b: (0, 0)),          # Wq_p (polar cols)^T
                pl.BlockSpec((DPOS, NH), lambda b: (0, 0)),          # Wq_p (pos cols)^T
                pl.BlockSpec((1, NH), lambda b: (0, 0)),             # bq_p
                pl.BlockSpec((1, NH), lambda b: (0, 0)),             # u_p
                pl.BlockSpec((1, H), lambda b: (0, 0)),              # v_hp_enc
                pl.BlockSpec((1, H), lambda b: (0, 0)),              # v_hap_enc
                pl.BlockSpec((1, DPOS), lambda b: (0, 0)),           # v_hap_pos
                pl.BlockSpec((H, H), lambda b: (0, 0)),              # Wd1[:, :H]^T
                pl.BlockSpec((H, H), lambda b: (0, 0)),              # Wd1[:, H:2H]^T
                pl.BlockSpec((H, H), lambda b: (0, 0)),              # Wd1[:, 2H:]^T
                pl.BlockSpec((1, H), lambda b: (0, 0)),              # bd1
                pl.BlockSpec((H, P_pad), lambda b: (0, 0)),          # Wd2^T (padded)
                pl.BlockSpec((1, P_pad), lambda b: (0, 0)),          # bd2 (padded)
            ],
            out_specs=pl.BlockSpec((TB, P_pad), lambda b: (b, 0)),
        ),
        compiler_params=pltpu.CompilerParams(
            dimension_semantics=("parallel",)),
    )(encoder_out, polar, position,
      wkp_pol_t, wkp_pos_t, bkp, wqp_pol_t, wqp_pos_t, bqp,
      u_p.astype(f32), v_hp_enc.astype(f32), v_hap_enc.astype(f32),
      v_hap_pos.astype(f32),
      wd1_max_t, wd1_sa_t, wd1_sp_t, bd1, wd2_t, bd2)
    return out[:B, :P]


def reference_forward(params, encoder_out, position, polar, aspect):
    """Pure-JAX forward mirroring the PyTorch PrimayPP module literally (eval)."""
    B, S, H = encoder_out.shape
    position = position[:, :S, :]
    polar = polar[:, :S, :]

    aspect_u = aspect @ params["wu"].T + params["bu"]                 # (B,1,E)

    # attention_p: dot_product self-attention, n_head=1
    pc = jnp.concatenate([polar, position], axis=-1)                  # (B,S,100)
    kx = pc @ params["wk_p"].T + params["bk_p"]
    qx = pc @ params["wq_p"].T + params["bq_p"]
    score = jax.nn.softmax(jnp.einsum("bqh,bkh->bqk", qx, kx), axis=-1)
    polar_att = (jnp.einsum("bqk,bkh->bqh", score, kx)
                 @ params["wproj_p"].T + params["bproj_p"])           # (B,S,100)

    def noquery_scores(k, q, wq, bq, wbl, wk, bk):
        qx_ = q @ wq.T + bq                       # (1,D)
        qw_ = qx_ @ wbl                           # (1,D)
        kx_ = k @ wk.T + bk                       # (B,S,D)
        sc_ = jnp.einsum("qd,bkd->bqk", qw_, kx_)  # (B,1,S)
        return jax.nn.softmax(sc_, axis=-1)

    hp = jnp.concatenate([encoder_out, polar_att], axis=-1)
    sc_hp = noquery_scores(hp, params["q_hp"], params["wq_hp"], params["bq_hp"],
                           params["w_hp_bl"], params["wk_hp"], params["bk_hp"])
    sp = jnp.einsum("bqk,bkh->bqh", sc_hp, encoder_out)[:, 0, :]

    hap = jnp.concatenate(
        [encoder_out, position,
         jnp.broadcast_to(aspect_u, (B, S, aspect_u.shape[-1]))], axis=-1)
    sc_hap = noquery_scores(hap, params["q_hap"], params["wq_hap"], params["bq_hap"],
                            params["w_hap_bl"], params["wk_hap"], params["bk_hap"])
    sa = jnp.einsum("bqk,bkh->bqh", sc_hap, encoder_out)[:, 0, :]

    s_max = jnp.max(encoder_out, axis=1)
    s = jnp.concatenate([s_max, sa, sp], axis=-1)                     # (B,3H)
    h1 = jnp.tanh(s @ params["wd1"].T + params["bd1"])                # dropout = id (eval)
    return h1 @ params["wd2"].T + params["bd2"]                       # (B,P)


def init_params(key, hidden_dim, word_embed_dim, position_dim, polar_dim, num_polar):
    H, E, PD, POLD, P = hidden_dim, word_embed_dim, position_dim, polar_dim, num_polar
    NH = POLD + PD                 # attention_p embed dim (50 + 50 = 100)
    D1 = NH + H                    # attention_hp embed dim (100 + hidden)
    D2 = E + H + PD                # attention_hap embed dim
    ks = iter(jax.random.split(key, 32))
    s = 0.1

    def w(shape):
        return s * jax.random.normal(next(ks), shape, jnp.float32)

    return {
        # aspect_u = nn.Linear(E, E)
        "wu": w((E, E)), "bu": w((E,)),
        # attention_p = Attention(100): dot_product, n_head=1, proj Linear(100,100)
        "wk_p": w((NH, NH)), "bk_p": w((NH,)),
        "wq_p": w((NH, NH)), "bq_p": w((NH,)),
        "wproj_p": w((NH, NH)), "bproj_p": w((NH,)),
        # attention_hp = NoQueryAttention(100 + H, bi_linear)
        "wk_hp": w((D1, D1)), "bk_hp": w((D1,)),
        "wq_hp": w((D1, D1)), "bq_hp": w((D1,)),
        "w_hp_bl": w((D1, D1)), "q_hp": w((1, D1)),
        # attention_hap = NoQueryAttention(E + H + PD, bi_linear)
        "wk_hap": w((D2, D2)), "bk_hap": w((D2,)),
        "wq_hap": w((D2, D2)), "bq_hap": w((D2,)),
        "w_hap_bl": w((D2, D2)), "q_hap": w((1, D2)),
        # dense = Linear(3H, H) -> Dropout -> Tanh -> Linear(H, P)
        "wd1": w((H, 3 * H)), "bd1": w((H,)),
        "wd2": w((P, H)), "bd2": w((P,)),
    }
    # NOTE: attention_s and the proj layers of attention_hp/hap are unused by
    # PrimayPP.forward (only the attention scores are consumed) -> omitted.


if __name__ == "__main__":
    B, S, H = 2, 8, 32            # batch, seq (= max(len_x)), hidden_dim
    E = 32                        # word_embed_dim
    PD = 50                       # position_dim
    POLD = 50                     # polar embedding dim (attention_p expects 50+50)
    P = 3                         # num_polar

    key = jax.random.PRNGKey(0)
    kp, k1, k2, k3, k4 = jax.random.split(key, 5)
    params = init_params(kp, hidden_dim=H, word_embed_dim=E, position_dim=PD,
                         polar_dim=POLD, num_polar=P)

    encoder_out = jax.random.normal(k1, (B, S, H), jnp.float32)
    position = jax.random.normal(k2, (B, S, PD), jnp.float32)
    polar = jax.random.normal(k3, (B, S, POLD), jnp.float32)
    aspect = jax.random.normal(k4, (B, 1, E), jnp.float32)
    len_x = jnp.array([S, S - 2], jnp.int32)   # max(len_x) == S

    out = primary_pp_forward(params, encoder_out, position, polar, aspect, len_x)
    out = jax.block_until_ready(out)

    ref = reference_forward(params, encoder_out, position, polar, aspect)
    assert out.shape == (B, P), out.shape
    # tolerance accounts for the approximate EUP reciprocal used for the score
    # softmax normalizations (per perf guidance); expected agreement ~1e-4.
    assert jnp.allclose(out, ref, rtol=2e-3, atol=2e-3), (out, ref)

    print("KERNEL_OK")
</pallas_src>

<mosaic_0001>
module attributes {stable_mosaic.version = 11 : i64} {
  func.func @primary_pp_kernel(%arg0: i32, %arg1: memref<2x8x32xf32, #tpu.memory_space<vmem>>, %arg2: memref<2x8x50xf32, #tpu.memory_space<vmem>>, %arg3: memref<2x8x50xf32, #tpu.memory_space<vmem>>, %arg4: memref<50x100xf32, #tpu.memory_space<vmem>>, %arg5: memref<50x100xf32, #tpu.memory_space<vmem>>, %arg6: memref<1x100xf32, #tpu.memory_space<vmem>>, %arg7: memref<50x100xf32, #tpu.memory_space<vmem>>, %arg8: memref<50x100xf32, #tpu.memory_space<vmem>>, %arg9: memref<1x100xf32, #tpu.memory_space<vmem>>, %arg10: memref<1x100xf32, #tpu.memory_space<vmem>>, %arg11: memref<1x32xf32, #tpu.memory_space<vmem>>, %arg12: memref<1x32xf32, #tpu.memory_space<vmem>>, %arg13: memref<1x50xf32, #tpu.memory_space<vmem>>, %arg14: memref<32x32xf32, #tpu.memory_space<vmem>>, %arg15: memref<32x32xf32, #tpu.memory_space<vmem>>, %arg16: memref<32x32xf32, #tpu.memory_space<vmem>>, %arg17: memref<1x32xf32, #tpu.memory_space<vmem>>, %arg18: memref<32x128xf32, #tpu.memory_space<vmem>>, %arg19: memref<1x128xf32, #tpu.memory_space<vmem>>, %arg20: memref<2x128xf32, #tpu.memory_space<vmem>>) attributes {dimension_semantics = [#tpu.dimension_semantics<parallel>], iteration_bounds = array<i64: 1>, scalar_prefetch = 0 : i64, scratch_operands = 0 : i64, tpu.core_type = #tpu.core_type<tc>, window_params = [{transform_indices = @transform_0, window_bounds = array<i64: 2, 8, 32>}, {transform_indices = @transform_1, window_bounds = array<i64: 2, 8, 50>}, {transform_indices = @transform_2, window_bounds = array<i64: 2, 8, 50>}, {pipeline_mode = #tpu.pipeline_mode<synchronous>, transform_indices = @transform_3, window_bounds = array<i64: 50, 100>}, {pipeline_mode = #tpu.pipeline_mode<synchronous>, transform_indices = @transform_4, window_bounds = array<i64: 50, 100>}, {pipeline_mode = #tpu.pipeline_mode<synchronous>, transform_indices = @transform_5, window_bounds = array<i64: 1, 100>}, {pipeline_mode = #tpu.pipeline_mode<synchronous>, transform_indices = @transform_6, window_bounds = array<i64: 50, 100>}, {pipeline_mode = #tpu.pipeline_mode<synchronous>, transform_indices = @transform_7, window_bounds = array<i64: 50, 100>}, {pipeline_mode = #tpu.pipeline_mode<synchronous>, transform_indices = @transform_8, window_bounds = array<i64: 1, 100>}, {pipeline_mode = #tpu.pipeline_mode<synchronous>, transform_indices = @transform_9, window_bounds = array<i64: 1, 100>}, {pipeline_mode = #tpu.pipeline_mode<synchronous>, transform_indices = @transform_10, window_bounds = array<i64: 1, 32>}, {pipeline_mode = #tpu.pipeline_mode<synchronous>, transform_indices = @transform_11, window_bounds = array<i64: 1, 32>}, {pipeline_mode = #tpu.pipeline_mode<synchronous>, transform_indices = @transform_12, window_bounds = array<i64: 1, 50>}, {pipeline_mode = #tpu.pipeline_mode<synchronous>, transform_indices = @transform_13, window_bounds = array<i64: 32, 32>}, {pipeline_mode = #tpu.pipeline_mode<synchronous>, transform_indices = @transform_14, window_bounds = array<i64: 32, 32>}, {pipeline_mode = #tpu.pipeline_mode<synchronous>, transform_indices = @transform_15, window_bounds = array<i64: 32, 32>}, {pipeline_mode = #tpu.pipeline_mode<synchronous>, transform_indices = @transform_16, window_bounds = array<i64: 1, 32>}, {pipeline_mode = #tpu.pipeline_mode<synchronous>, transform_indices = @transform_17, window_bounds = array<i64: 32, 128>}, {pipeline_mode = #tpu.pipeline_mode<synchronous>, transform_indices = @transform_18, window_bounds = array<i64: 1, 128>}, {transform_indices = @transform_19, window_bounds = array<i64: 2, 128>}]} {
    %c0 = arith.constant 0 : index
    %c0_0 = arith.constant 0 : index
    %c0_1 = arith.constant 0 : index
    %0 = vector.load %arg1[%c0, %c0_0, %c0_1] : memref<2x8x32xf32, #tpu.memory_space<vmem>>, vector<2x8x32xf32>
    %c0_2 = arith.constant 0 : index
    %c0_3 = arith.constant 0 : index
    %c0_4 = arith.constant 0 : index
    %1 = vector.load %arg2[%c0_2, %c0_3, %c0_4] : memref<2x8x50xf32, #tpu.memory_space<vmem>>, vector<2x8x50xf32>
    %c0_5 = arith.constant 0 : index
    %c0_6 = arith.constant 0 : index
    %c0_7 = arith.constant 0 : index
    %2 = vector.load %arg3[%c0_5, %c0_6, %c0_7] : memref<2x8x50xf32, #tpu.memory_space<vmem>>, vector<2x8x50xf32>
    %3 = vector.shape_cast %1 : vector<2x8x50xf32> to vector<16x50xf32>
    %4 = vector.shape_cast %2 : vector<2x8x50xf32> to vector<16x50xf32>
    %c0_8 = arith.constant 0 : index
    %c0_9 = arith.constant 0 : index
    %5 = vector.load %arg4[%c0_8, %c0_9] : memref<50x100xf32, #tpu.memory_space<vmem>>, vector<50x100xf32>
    %cst = arith.constant dense<0.000000e+00> : vector<16x100xf32>
    %6 = tpu.matmul %3, %5, %cst {dimension_numbers = #tpu.dot_dimension_numbers<[1], [0], [0], [1], [0, 0, 1, 1], [], []>} : vector<16x50xf32>, vector<50x100xf32>, vector<16x100xf32> -> vector<16x100xf32>
    %c0_10 = arith.constant 0 : index
    %c0_11 = arith.constant 0 : index
    %7 = vector.load %arg5[%c0_10, %c0_11] : memref<50x100xf32, #tpu.memory_space<vmem>>, vector<50x100xf32>
    %cst_12 = arith.constant dense<0.000000e+00> : vector<16x100xf32>
    %8 = tpu.matmul %4, %7, %cst_12 {dimension_numbers = #tpu.dot_dimension_numbers<[1], [0], [0], [1], [0, 0, 1, 1], [], []>} : vector<16x50xf32>, vector<50x100xf32>, vector<16x100xf32> -> vector<16x100xf32>
    %9 = arith.addf %6, %8 : vector<16x100xf32>
    %c0_13 = arith.constant 0 : index
    %c0_14 = arith.constant 0 : index
    %10 = vector.load %arg6[%c0_13, %c0_14] : memref<1x100xf32, #tpu.memory_space<vmem>>, vector<1x100xf32>
    %11 = vector.broadcast %10 : vector<1x100xf32> to vector<16x100xf32>
    %12 = arith.addf %9, %11 : vector<16x100xf32>
    %c0_15 = arith.constant 0 : index
    %c0_16 = arith.constant 0 : index
    %13 = vector.load %arg7[%c0_15, %c0_16] : memref<50x100xf32, #tpu.memory_space<vmem>>, vector<50x100xf32>
    %cst_17 = arith.constant dense<0.000000e+00> : vector<16x100xf32>
    %14 = tpu.matmul %3, %13, %cst_17 {dimension_numbers = #tpu.dot_dimension_numbers<[1], [0], [0], [1], [0, 0, 1, 1], [], []>} : vector<16x50xf32>, vector<50x100xf32>, vector<16x100xf32> -> vector<16x100xf32>
    %c0_18 = arith.constant 0 : index
    %c0_19 = arith.constant 0 : index
    %15 = vector.load %arg8[%c0_18, %c0_19] : memref<50x100xf32, #tpu.memory_space<vmem>>, vector<50x100xf32>
    %cst_20 = arith.constant dense<0.000000e+00> : vector<16x100xf32>
    %16 = tpu.matmul %4, %15, %cst_20 {dimension_numbers = #tpu.dot_dimension_numbers<[1], [0], [0], [1], [0, 0, 1, 1], [], []>} : vector<16x50xf32>, vector<50x100xf32>, vector<16x100xf32> -> vector<16x100xf32>
    %17 = arith.addf %14, %16 : vector<16x100xf32>
    %c0_21 = arith.constant 0 : index
    %c0_22 = arith.constant 0 : index
    %18 = vector.load %arg9[%c0_21, %c0_22] : memref<1x100xf32, #tpu.memory_space<vmem>>, vector<1x100xf32>
    %19 = vector.broadcast %18 : vector<1x100xf32> to vector<16x100xf32>
    %20 = arith.addf %17, %19 : vector<16x100xf32>
    %21 = vector.shape_cast %12 : vector<16x100xf32> to vector<2x8x100xf32>
    %22 = vector.shape_cast %20 : vector<16x100xf32> to vector<2x8x100xf32>
    "tpu.trace_start"() <{level = 10 : i32, message = "bqh,bkh->bqk"}> : () -> ()
    %cst_23 = arith.constant dense<0.000000e+00> : vector<2x8x8xf32>
    %23 = tpu.matmul %22, %21, %cst_23 {dimension_numbers = #tpu.dot_dimension_numbers<[2], [2], [1], [1], [0, 0, 0, 1, 1, 1], [0], [0]>} : vector<2x8x100xf32>, vector<2x8x100xf32>, vector<2x8x8xf32> -> vector<2x8x8xf32>
    "tpu.trace_stop"() : () -> ()
    %cst_24 = arith.constant dense<0xFF800000> : vector<2x8xf32>
    %24 = vector.multi_reduction <maximumf>, %23, %cst_24 [2] : vector<2x8x8xf32> to vector<2x8xf32>
    %25 = vector.shape_cast %24 : vector<2x8xf32> to vector<2x8x1xf32>
    %26 = vector.broadcast %25 : vector<2x8x1xf32> to vector<2x8x8xf32>
    %27 = arith.subf %23, %26 : vector<2x8x8xf32>
    %28 = math.exp %27 : vector<2x8x8xf32>
    %cst_25 = arith.constant dense<0.000000e+00> : vector<2x8xf32>
    %29 = vector.multi_reduction <add>, %28, %cst_25 [2] : vector<2x8x8xf32> to vector<2x8xf32>
    %30 = vector.shape_cast %29 : vector<2x8xf32> to vector<2x8x1xf32>
    %31 = tpu.reciprocal %30 : vector<2x8x1xf32> -> vector<2x8x1xf32>
    %32 = vector.broadcast %31 : vector<2x8x1xf32> to vector<2x8x8xf32>
    %33 = arith.mulf %28, %32 : vector<2x8x8xf32>
    %c0_26 = arith.constant 0 : index
    %c0_27 = arith.constant 0 : index
    %34 = vector.load %arg10[%c0_26, %c0_27] : memref<1x100xf32, #tpu.memory_space<vmem>>, vector<1x100xf32>
    %35 = vector.shape_cast %34 : vector<1x100xf32> to vector<1x1x100xf32>
    %36 = vector.shape_cast %35 : vector<1x1x100xf32> to vector<1x1x100xf32>
    %37 = vector.broadcast %36 : vector<1x1x100xf32> to vector<2x1x100xf32>
    "tpu.trace_start"() <{level = 10 : i32, message = "bqh,bkh->bqk"}> : () -> ()
    %cst_28 = arith.constant dense<0.000000e+00> : vector<2x1x8xf32>
    %38 = tpu.matmul %37, %21, %cst_28 {dimension_numbers = #tpu.dot_dimension_numbers<[2], [2], [1], [1], [0, 0, 0, 1, 1, 1], [0], [0]>} : vector<2x1x100xf32>, vector<2x8x100xf32>, vector<2x1x8xf32> -> vector<2x1x8xf32>
    "tpu.trace_stop"() : () -> ()
    "tpu.trace_start"() <{level = 10 : i32, message = "bqj,bkj->bqk"}> : () -> ()
    %cst_29 = arith.constant dense<0.000000e+00> : vector<2x1x8xf32>
    %39 = tpu.matmul %38, %33, %cst_29 {dimension_numbers = #tpu.dot_dimension_numbers<[2], [2], [1], [1], [0, 0, 0, 1, 1, 1], [0], [0]>} : vector<2x1x8xf32>, vector<2x8x8xf32>, vector<2x1x8xf32> -> vector<2x1x8xf32>
    "tpu.trace_stop"() : () -> ()
    %c0_30 = arith.constant 0 : index
    %c0_31 = arith.constant 0 : index
    %40 = vector.load %arg11[%c0_30, %c0_31] : memref<1x32xf32, #tpu.memory_space<vmem>>, vector<1x32xf32>
    %41 = vector.shape_cast %40 : vector<1x32xf32> to vector<1x1x32xf32>
    %42 = vector.shape_cast %41 : vector<1x1x32xf32> to vector<1x1x32xf32>
    %43 = vector.broadcast %42 : vector<1x1x32xf32> to vector<2x1x32xf32>
    "tpu.trace_start"() <{level = 10 : i32, message = "bqh,bkh->bqk"}> : () -> ()
    %cst_32 = arith.constant dense<0.000000e+00> : vector<2x1x8xf32>
    %44 = tpu.matmul %43, %0, %cst_32 {dimension_numbers = #tpu.dot_dimension_numbers<[2], [2], [1], [1], [0, 0, 0, 1, 1, 1], [0], [0]>} : vector<2x1x32xf32>, vector<2x8x32xf32>, vector<2x1x8xf32> -> vector<2x1x8xf32>
    "tpu.trace_stop"() : () -> ()
    %45 = arith.addf %44, %39 : vector<2x1x8xf32>
    %cst_33 = arith.constant dense<0xFF800000> : vector<2x1xf32>
    %46 = vector.multi_reduction <maximumf>, %45, %cst_33 [2] : vector<2x1x8xf32> to vector<2x1xf32>
    %47 = vector.shape_cast %46 : vector<2x1xf32> to vector<2x1x1xf32>
    %48 = vector.broadcast %47 : vector<2x1x1xf32> to vector<2x1x8xf32>
    %49 = arith.subf %45, %48 : vector<2x1x8xf32>
    %50 = math.exp %49 : vector<2x1x8xf32>
    "tpu.trace_start"() <{level = 10 : i32, message = "bqk,bkd->bqd"}> : () -> ()
    %cst_34 = arith.constant dense<0.000000e+00> : vector<2x1x32xf32>
    %51 = tpu.matmul %50, %0, %cst_34 {dimension_numbers = #tpu.dot_dimension_numbers<[2], [1], [1], [2], [0, 0, 0, 1, 1, 2], [0], [0]>} : vector<2x1x8xf32>, vector<2x8x32xf32>, vector<2x1x32xf32> -> vector<2x1x32xf32>
    "tpu.trace_stop"() : () -> ()
    %cst_35 = arith.constant dense<0.000000e+00> : vector<2x1xf32>
    %52 = vector.multi_reduction <add>, %50, %cst_35 [2] : vector<2x1x8xf32> to vector<2x1xf32>
    %53 = vector.shape_cast %52 : vector<2x1xf32> to vector<2x1x1xf32>
    %54 = tpu.reciprocal %53 {approx = true} : vector<2x1x1xf32> -> vector<2x1x1xf32>
    %55 = vector.broadcast %54 : vector<2x1x1xf32> to vector<2x1x32xf32>
    %56 = arith.mulf %51, %55 : vector<2x1x32xf32>
    %c0_36 = arith.constant 0 : index
    %c0_37 = arith.constant 0 : index
    %57 = vector.load %arg12[%c0_36, %c0_37] : memref<1x32xf32, #tpu.memory_space<vmem>>, vector<1x32xf32>
    %58 = vector.shape_cast %57 : vector<1x32xf32> to vector<1x1x32xf32>
    %59 = vector.shape_cast %58 : vector<1x1x32xf32> to vector<1x1x32xf32>
    %60 = vector.broadcast %59 : vector<1x1x32xf32> to vector<2x1x32xf32>
    %c0_38 = arith.constant 0 : index
    %c0_39 = arith.constant 0 : index
    %61 = vector.load %arg13[%c0_38, %c0_39] : memref<1x50xf32, #tpu.memory_space<vmem>>, vector<1x50xf32>
    %62 = vector.shape_cast %61 : vector<1x50xf32> to vector<1x1x50xf32>
    %63 = vector.shape_cast %62 : vector<1x1x50xf32> to vector<1x1x50xf32>
    %64 = vector.broadcast %63 : vector<1x1x50xf32> to vector<2x1x50xf32>
    "tpu.trace_start"() <{level = 10 : i32, message = "bqh,bkh->bqk"}> : () -> ()
    %cst_40 = arith.constant dense<0.000000e+00> : vector<2x1x8xf32>
    %65 = tpu.matmul %60, %0, %cst_40 {dimension_numbers = #tpu.dot_dimension_numbers<[2], [2], [1], [1], [0, 0, 0, 1, 1, 1], [0], [0]>} : vector<2x1x32xf32>, vector<2x8x32xf32>, vector<2x1x8xf32> -> vector<2x1x8xf32>
    "tpu.trace_stop"() : () -> ()
    "tpu.trace_start"() <{level = 10 : i32, message = "bqp,bkp->bqk"}> : () -> ()
    %cst_41 = arith.constant dense<0.000000e+00> : vector<2x1x8xf32>
    %66 = tpu.matmul %64, %2, %cst_41 {dimension_numbers = #tpu.dot_dimension_numbers<[2], [2], [1], [1], [0, 0, 0, 1, 1, 1], [0], [0]>} : vector<2x1x50xf32>, vector<2x8x50xf32>, vector<2x1x8xf32> -> vector<2x1x8xf32>
    "tpu.trace_stop"() : () -> ()
    %67 = arith.addf %65, %66 : vector<2x1x8xf32>
    %cst_42 = arith.constant dense<0xFF800000> : vector<2x1xf32>
    %68 = vector.multi_reduction <maximumf>, %67, %cst_42 [2] : vector<2x1x8xf32> to vector<2x1xf32>
    %69 = vector.shape_cast %68 : vector<2x1xf32> to vector<2x1x1xf32>
    %70 = vector.broadcast %69 : vector<2x1x1xf32> to vector<2x1x8xf32>
    %71 = arith.subf %67, %70 : vector<2x1x8xf32>
    %72 = math.exp %71 : vector<2x1x8xf32>
    "tpu.trace_start"() <{level = 10 : i32, message = "bqk,bkd->bqd"}> : () -> ()
    %cst_43 = arith.constant dense<0.000000e+00> : vector<2x1x32xf32>
    %73 = tpu.matmul %72, %0, %cst_43 {dimension_numbers = #tpu.dot_dimension_numbers<[2], [1], [1], [2], [0, 0, 0, 1, 1, 2], [0], [0]>} : vector<2x1x8xf32>, vector<2x8x32xf32>, vector<2x1x32xf32> -> vector<2x1x32xf32>
    "tpu.trace_stop"() : () -> ()
    %cst_44 = arith.constant dense<0.000000e+00> : vector<2x1xf32>
    %74 = vector.multi_reduction <add>, %72, %cst_44 [2] : vector<2x1x8xf32> to vector<2x1xf32>
    %75 = vector.shape_cast %74 : vector<2x1xf32> to vector<2x1x1xf32>
    %76 = tpu.reciprocal %75 {approx = true} : vector<2x1x1xf32> -> vector<2x1x1xf32>
    %77 = vector.broadcast %76 : vector<2x1x1xf32> to vector<2x1x32xf32>
    %78 = arith.mulf %73, %77 : vector<2x1x32xf32>
    %cst_45 = arith.constant dense<0xFF800000> : vector<2x32xf32>
    %79 = vector.multi_reduction <maximumf>, %0, %cst_45 [1] : vector<2x8x32xf32> to vector<2x32xf32>
    %80 = vector.shape_cast %78 : vector<2x1x32xf32> to vector<2x32xf32>
    %81 = vector.shape_cast %56 : vector<2x1x32xf32> to vector<2x32xf32>
    %c0_46 = arith.constant 0 : index
    %c0_47 = arith.constant 0 : index
    %82 = vector.load %arg14[%c0_46, %c0_47] : memref<32x32xf32, #tpu.memory_space<vmem>>, vector<32x32xf32>
    %cst_48 = arith.constant dense<0.000000e+00> : vector<2x32xf32>
    %83 = tpu.matmul %79, %82, %cst_48 {dimension_numbers = #tpu.dot_dimension_numbers<[1], [0], [0], [1], [0, 0, 1, 1], [], []>} : vector<2x32xf32>, vector<32x32xf32>, vector<2x32xf32> -> vector<2x32xf32>
    %c0_49 = arith.constant 0 : index
    %c0_50 = arith.constant 0 : index
    %84 = vector.load %arg15[%c0_49, %c0_50] : memref<32x32xf32, #tpu.memory_space<vmem>>, vector<32x32xf32>
    %cst_51 = arith.constant dense<0.000000e+00> : vector<2x32xf32>
    %85 = tpu.matmul %80, %84, %cst_51 {dimension_numbers = #tpu.dot_dimension_numbers<[1], [0], [0], [1], [0, 0, 1, 1], [], []>} : vector<2x32xf32>, vector<32x32xf32>, vector<2x32xf32> -> vector<2x32xf32>
    %86 = arith.addf %83, %85 : vector<2x32xf32>
    %c0_52 = arith.constant 0 : index
    %c0_53 = arith.constant 0 : index
    %87 = vector.load %arg16[%c0_52, %c0_53] : memref<32x32xf32, #tpu.memory_space<vmem>>, vector<32x32xf32>
    %cst_54 = arith.constant dense<0.000000e+00> : vector<2x32xf32>
    %88 = tpu.matmul %81, %87, %cst_54 {dimension_numbers = #tpu.dot_dimension_numbers<[1], [0], [0], [1], [0, 0, 1, 1], [], []>} : vector<2x32xf32>, vector<32x32xf32>, vector<2x32xf32> -> vector<2x32xf32>
    %89 = arith.addf %86, %88 : vector<2x32xf32>
    %c0_55 = arith.constant 0 : index
    %c0_56 = arith.constant 0 : index
    %90 = vector.load %arg17[%c0_55, %c0_56] : memref<1x32xf32, #tpu.memory_space<vmem>>, vector<1x32xf32>
    %91 = vector.broadcast %90 : vector<1x32xf32> to vector<2x32xf32>
    %92 = arith.addf %89, %91 : vector<2x32xf32>
    %93 = math.tanh %92 : vector<2x32xf32>
    %c0_57 = arith.constant 0 : index
    %c0_58 = arith.constant 0 : index
    %94 = vector.load %arg18[%c0_57, %c0_58] : memref<32x128xf32, #tpu.memory_space<vmem>>, vector<32x128xf32>
    %cst_59 = arith.constant dense<0.000000e+00> : vector<2x128xf32>
    %95 = tpu.matmul %93, %94, %cst_59 {dimension_numbers = #tpu.dot_dimension_numbers<[1], [0], [0], [1], [0, 0, 1, 1], [], []>} : vector<2x32xf32>, vector<32x128xf32>, vector<2x128xf32> -> vector<2x128xf32>
    %c0_60 = arith.constant 0 : index
    %c0_61 = arith.constant 0 : index
    %96 = vector.load %arg19[%c0_60, %c0_61] : memref<1x128xf32, #tpu.memory_space<vmem>>, vector<1x128xf32>
    %97 = vector.broadcast %96 : vector<1x128xf32> to vector<2x128xf32>
    %98 = arith.addf %95, %97 : vector<2x128xf32>
    %c0_62 = arith.constant 0 : index
    %c0_63 = arith.constant 0 : index
    %99 = vector.load %arg20[%c0_62, %c0_63] : memref<2x128xf32, #tpu.memory_space<vmem>>, vector<2x128xf32>
    tpu.vector_store %arg20[%c0_62, %c0_63], %98 {strides = array<i32>} : memref<2x128xf32, #tpu.memory_space<vmem>>, vector<2x128xf32>,
    return
  }
  func.func @transform_0(%arg0: i32) -> (i32, i32, i32) {
    %c0_i32 = arith.constant 0 : i32
    %c0_i32_0 = arith.constant 0 : i32
    %c0_i32_1 = arith.constant 0 : i32
    return %arg0, %c0_i32, %c0_i32_0 : i32, i32, i32
  }
  func.func @transform_1(%arg0: i32) -> (i32, i32, i32) {
    %c0_i32 = arith.constant 0 : i32
    %c0_i32_0 = arith.constant 0 : i32
    %c0_i32_1 = arith.constant 0 : i32
    return %arg0, %c0_i32, %c0_i32_0 : i32, i32, i32
  }
  func.func @transform_2(%arg0: i32) -> (i32, i32, i32) {
    %c0_i32 = arith.constant 0 : i32
    %c0_i32_0 = arith.constant 0 : i32
    %c0_i32_1 = arith.constant 0 : i32
    return %arg0, %c0_i32, %c0_i32_0 : i32, i32, i32
  }
  func.func @transform_3(%arg0: i32) -> (i32, i32) {
    %c0_i32 = arith.constant 0 : i32
    %c0_i32_0 = arith.constant 0 : i32
    %c0_i32_1 = arith.constant 0 : i32
    return %c0_i32, %c0_i32_0 : i32, i32
  }
  func.func @transform_4(%arg0: i32) -> (i32, i32) {
    %c0_i32 = arith.constant 0 : i32
    %c0_i32_0 = arith.constant 0 : i32
    %c0_i32_1 = arith.constant 0 : i32
    return %c0_i32, %c0_i32_0 : i32, i32
  }
  func.func @transform_5(%arg0: i32) -> (i32, i32) {
    %c0_i32 = arith.constant 0 : i32
    %c0_i32_0 = arith.constant 0 : i32
    %c0_i32_1 = arith.constant 0 : i32
    return %c0_i32, %c0_i32_0 : i32, i32
  }
  func.func @transform_6(%arg0: i32) -> (i32, i32) {
    %c0_i32 = arith.constant 0 : i32
    %c0_i32_0 = arith.constant 0 : i32
    %c0_i32_1 = arith.constant 0 : i32
    return %c0_i32, %c0_i32_0 : i32, i32
  }
  func.func @transform_7(%arg0: i32) -> (i32, i32) {
    %c0_i32 = arith.constant 0 : i32
    %c0_i32_0 = arith.constant 0 : i32
    %c0_i32_1 = arith.constant 0 : i32
    return %c0_i32, %c0_i32_0 : i32, i32
  }
  func.func @transform_8(%arg0: i32) -> (i32, i32) {
    %c0_i32 = arith.constant 0 : i32
    %c0_i32_0 = arith.constant 0 : i32
    %c0_i32_1 = arith.constant 0 : i32
    return %c0_i32, %c0_i32_0 : i32, i32
  }
  func.func @transform_9(%arg0: i32) -> (i32, i32) {
    %c0_i32 = arith.constant 0 : i32
    %c0_i32_0 = arith.constant 0 : i32
    %c0_i32_1 = arith.constant 0 : i32
    return %c0_i32, %c0_i32_0 : i32, i32
  }
  func.func @transform_10(%arg0: i32) -> (i32, i32) {
    %c0_i32 = arith.constant 0 : i32
    %c0_i32_0 = arith.constant 0 : i32
    %c0_i32_1 = arith.constant 0 : i32
    return %c0_i32, %c0_i32_0 : i32, i32
  }
  func.func @transform_11(%arg0: i32) -> (i32, i32) {
    %c0_i32 = arith.constant 0 : i32
    %c0_i32_0 = arith.constant 0 : i32
    %c0_i32_1 = arith.constant 0 : i32
    return %c0_i32, %c0_i32_0 : i32, i32
  }
  func.func @transform_12(%arg0: i32) -> (i32, i32) {
    %c0_i32 = arith.constant 0 : i32
    %c0_i32_0 = arith.constant 0 : i32
    %c0_i32_1 = arith.constant 0 : i32
    return %c0_i32, %c0_i32_0 : i32, i32
  }
  func.func @transform_13(%arg0: i32) -> (i32, i32) {
    %c0_i32 = arith.constant 0 : i32
    %c0_i32_0 = arith.constant 0 : i32
    %c0_i32_1 = arith.constant 0 : i32
    return %c0_i32, %c0_i32_0 : i32, i32
  }
  func.func @transform_14(%arg0: i32) -> (i32, i32) {
    %c0_i32 = arith.constant 0 : i32
    %c0_i32_0 = arith.constant 0 : i32
    %c0_i32_1 = arith.constant 0 : i32
    return %c0_i32, %c0_i32_0 : i32, i32
  }
  func.func @transform_15(%arg0: i32) -> (i32, i32) {
    %c0_i32 = arith.constant 0 : i32
    %c0_i32_0 = arith.constant 0 : i32
    %c0_i32_1 = arith.constant 0 : i32
    return %c0_i32, %c0_i32_0 : i32, i32
  }
  func.func @transform_16(%arg0: i32) -> (i32, i32) {
    %c0_i32 = arith.constant 0 : i32
    %c0_i32_0 = arith.constant 0 : i32
    %c0_i32_1 = arith.constant 0 : i32
    return %c0_i32, %c0_i32_0 : i32, i32
  }
  func.func @transform_17(%arg0: i32) -> (i32, i32) {
    %c0_i32 = arith.constant 0 : i32
    %c0_i32_0 = arith.constant 0 : i32
    %c0_i32_1 = arith.constant 0 : i32
    return %c0_i32, %c0_i32_0 : i32, i32
  }
  func.func @transform_18(%arg0: i32) -> (i32, i32) {
    %c0_i32 = arith.constant 0 : i32
    %c0_i32_0 = arith.constant 0 : i32
    %c0_i32_1 = arith.constant 0 : i32
    return %c0_i32, %c0_i32_0 : i32, i32
  }
  func.func @transform_19(%arg0: i32) -> (i32, i32) {
    %c0_i32 = arith.constant 0 : i32
    %c0_i32_0 = arith.constant 0 : i32
    return %arg0, %c0_i32 : i32, i32
  }
}

</mosaic_0001>

<bundles_post_ra>
// kernel: tpu_custom_call.1
= control target key start
LH: loop header
LB: loop body
LE: loop exit
PB: predicated region body
PF: predicated region fallthrough
CT: control target
= control target key end

     0   :  { %s3685_s0 = inlined_call_operand.hbm [shape: f32[2,8,32], index: 0, kind: input, shape index: {}]   ;;  %s3686_s1 = inlined_call_operand.hbm [shape: f32[2,8,50], index: 1, kind: input, shape index: {}]   ;;  %s3687_s2 = inlined_call_operand.hbm [shape: f32[2,8,50], index: 2, kind: input, shape index: {}]   ;;  %s3688_s3 = inlined_call_operand.hbm [shape: f32[50,100], index: 3, kind: input, shape index: {}]   ;;  %s3689_s4 = inlined_call_operand.hbm [shape: f32[50,100], index: 4, kind: input, shape index: {}]   ;;  %s3690_s5 = inlined_call_operand.hbm [shape: f32[1,100], index: 5, kind: input, shape index: {}]   ;;  %s3691_s6 = inlined_call_operand.hbm [shape: f32[50,100], index: 6, kind: input, shape index: {}]   ;;  %s3692_s7 = inlined_call_operand.hbm [shape: f32[50,100], index: 7, kind: input, shape index: {}]   ;;  %s3693_s8 = inlined_call_operand.hbm [shape: f32[1,100], index: 8, kind: input, shape index: {}]   ;;  %s3694_s9 = inlined_call_operand.hbm [shape: f32[1,100], index: 9, kind: input, shape index: {}]   ;;  %s3695_s10 = inlined_call_operand.hbm [shape: f32[1,32], index: 10, kind: input, shape index: {}]   ;;  %s3696_s11 = inlined_call_operand.hbm [shape: f32[1,32], index: 11, kind: input, shape index: {}]   ;;  %s3697_s12 = inlined_call_operand.hbm [shape: f32[1,50], index: 12, kind: input, shape index: {}]   ;;  %s3698_s13 = inlined_call_operand.vmem [shape: f32[32,32], index: 13, kind: input, shape index: {}]   ;;  %s3699_s14 = inlined_call_operand.hbm [shape: f32[32,32], index: 14, kind: input, shape index: {}]   ;;  %s3700_s15 = inlined_call_operand.hbm [shape: f32[32,32], index: 15, kind: input, shape index: {}]   ;;  %s3701_s16 = inlined_call_operand.hbm [shape: f32[1,32], index: 16, kind: input, shape index: {}]   ;;  %s3702_s17 = inlined_call_operand.vmem [shape: f32[32,128], index: 17, kind: input, shape index: {}]   ;;  %s3703_s18 = inlined_call_operand.vmem [shape: f32[1,128], index: 18, kind: input, shape index: {}]   ;;  %s3704_s19 = inlined_call_operand.hbm [shape: f32[2,128], index: 19, kind: output, shape index: {}]  }
   0x1   :  { %3710 = sst [smem:[#allocation39_spill]] %s3685_s0 }
   0x2   :  { %3711 = sst [smem:[#allocation40_spill]] %s3686_s1 }
   0x3   :  { %3712 = sst [smem:[#allocation41_spill]] %s3687_s2 }
   0x4   :  { %3713 = sst [smem:[#allocation42_spill]] %s3688_s3 }
   0x5   :  { %3714 = sst [smem:[#allocation43_spill]] %s3703_s18 }
   0x6   :  { %3715 = sst [smem:[#allocation44_spill]] %s3704_s19 }
   0x7   :  { %24 = vsyncpa [#allocation3], 0 }
   0x8   :  { %25 = vsyncpa [#allocation6], 0 }
   0x9   :  { %26 = vsyncpa [#allocation9], 0 }
   0xa   :  { %27 = vsyncpa [#allocation12], 0 }
   0xb   :  { %28 = vsyncpa [#allocation15], 0 }
   0xc   :  { %29 = vsyncpa [#allocation18], 0 }
   0xd   :  { %30 = vsyncpa [#allocation21], 0 }
   0xe   :  { %31 = vsyncpa [#allocation24], 0 }
   0xf   :  { %32 = vsyncpa [#allocation27], 0 }
  0x10   :  { %33 = vsyncpa [#allocation4], 0  ;;  %s3118_s0 = smov [#allocation5]   ;;  %s3119_s20 = smov [#allocation8]  }
  0x11   :  { %s51_s30 = sshll.u32 %s3118_s0, 4  ;;  %s75_s21 = sshll.u32 %s3119_s20, 4  ;;  %s52_s30 = int_to_ptr.vmem [resolvable:$true] %s51_s30  ;;  %s3240_s21 = int_to_ptr.vmem [resolvable:$true] %s75_s21 }
  0x12   :  { %s3716_s2 = sld [smem:[#allocation40_spill]] }
  0x18   :  { %s2724_s23 = scalar_lea.hbm %s3716_s2, 256 }
  0x19   :  { %p2725_p0 = scmp.ne.s32.totalorder %s3716_s2, %s2724_s23  ;;  %p2728_p1 = scmp.lt.u32.totalorder %s2724_s23, %s3716_s2 }
  0x1b   :  { %p2730_p2 = pnand %p2728_p1, %p2725_p0 }
  0x1d   :  { %2733 = shalt.err (!%p2730_p2)
}
  0x1e   :  { %s2734_s27 = scalar_lea.vmem %s52_s30, 256  ;;  %p2739_p4 = scmp.lt.s32.totalorder %s52_s30, %s52_s30 }
  0x1f   :  { %p2735_p3 = scmp.ne.s32.totalorder %s52_s30, %s2734_s27  ;;  %p2740_p5 = scmp.lt.s32.totalorder %s2734_s27, %s2734_s27 }
  0x21   :  { %p2741_p6 = por %p2740_p5, %p2739_p4 }
  0x23   :  { %p2742_p7 = pnand %p2741_p6, %p2735_p3 }
  0x25   :  { %2745 = shalt.err (!%p2742_p7)
}
  0x26   :  { %s3120_s28 = smov 128   ;;  %s3121_s29 = smov 8  }
  0x27   :  { %57 = dma.hbm_to_vmem [thread:$0]  %s3716_s2, 256, %s52_s30, [#allocation6], %s3120_s28, %s3120_s28, %s3121_s29  }
  0x28   :  { %s3717_s23 = sld [smem:[#allocation42_spill]] }
  0x2e   :  { %s2746_s24 = scalar_lea.hbm %s3717_s23, 896 }
  0x2f   :  { %p2747_p8 = scmp.ne.s32.totalorder %s3717_s23, %s2746_s24  ;;  %p2750_p9 = scmp.lt.u32.totalorder %s2746_s24, %s3717_s23 }
  0x31   :  { %p2752_p10 = pnand %p2750_p9, %p2747_p8 }
  0x33   :  { %2755 = shalt.err (!%p2752_p10)
}
  0x34   :  { %s2756_s19 = scalar_lea.vmem %s3240_s21, 896  ;;  %p2761_p12 = scmp.lt.s32.totalorder %s3240_s21, %s3240_s21 }
  0x35   :  { %p2757_p11 = scmp.ne.s32.totalorder %s3240_s21, %s2756_s19  ;;  %p2762_p13 = scmp.lt.s32.totalorder %s2756_s19, %s2756_s19 }
  0x37   :  { %p2763_p0 = por %p2762_p13, %p2761_p12 }
  0x39   :  { %p2764_p1 = pnand %p2763_p0, %p2757_p11 }
  0x3b   :  { %2767 = shalt.err (!%p2764_p1)
}
  0x3c   :  { %81 = dma.hbm_to_vmem [thread:$0]  %s3717_s23, 896, %s3240_s21, [#allocation9], %s3120_s28, %s3120_s28, %s3121_s29  }
  0x3d   :  { %s3122_s0 = smov [#allocation11]   ;;  %s3123_s1 = smov [#allocation14]  }
  0x3e   :  { %s100_s20 = sshll.u32 %s3122_s0, 4  ;;  %s121_s22 = sshll.u32 %s3123_s1, 4  ;;  %s101_s20 = int_to_ptr.vmem [resolvable:$true] %s100_s20  ;;  %s3277_s22 = int_to_ptr.vmem [resolvable:$true] %s121_s22 }
  0x3f   :  { %s2768_s25 = scalar_lea.hbm %s3690_s5, 16 }
  0x40   :  { %p2769_p2 = scmp.ne.s32.totalorder %s3690_s5, %s2768_s25  ;;  %p2772_p3 = scmp.lt.u32.totalorder %s2768_s25, %s3690_s5 }
  0x42   :  { %p2774_p4 = pnand %p2772_p3, %p2769_p2 }
  0x44   :  { %2777 = shalt.err (!%p2774_p4)
}
  0x45   :  { %s2778_s21 = scalar_lea.vmem %s101_s20, 16  ;;  %s2782_s23 = scalar_lea.vmem %s101_s20, 32 }
  0x46   :  { %p2779_p5 = scmp.ne.s32.totalorder %s101_s20, %s2778_s21  ;;  %p2783_p6 = scmp.lt.s32.totalorder %s101_s20, %s101_s20 }
  0x47   :  { %p2784_p7 = scmp.lt.s32.totalorder %s2782_s23, %s2778_s21 }
  0x49   :  { %p2785_p8 = por %p2784_p7, %p2783_p6 }
  0x4b   :  { %p2786_p9 = pnand %p2785_p8, %p2779_p5 }
  0x4d   :  { %2789 = shalt.err (!%p2786_p9)
}
  0x4e   :  { %103 = dma.hbm_to_vmem [thread:$0]  %s3690_s5, 16, %s101_s20, [#allocation12]  }
  0x4f   :  { %s2790_s24 = scalar_lea.hbm %s3692_s7, 896 }
  0x50   :  { %p2791_p10 = scmp.ne.s32.totalorder %s3692_s7, %s2790_s24  ;;  %p2794_p11 = scmp.lt.u32.totalorder %s2790_s24, %s3692_s7 }
  0x52   :  { %p2796_p12 = pnand %p2794_p11, %p2791_p10 }
  0x54   :  { %2799 = shalt.err (!%p2796_p12)
}
  0x55   :  { %s2800_s26 = scalar_lea.vmem %s3277_s22, 896  ;;  %p2805_p0 = scmp.lt.s32.totalorder %s3277_s22, %s3277_s22 }
  0x56   :  { %p2801_p13 = scmp.ne.s32.totalorder %s3277_s22, %s2800_s26  ;;  %p2806_p1 = scmp.lt.s32.totalorder %s2800_s26, %s2800_s26 }
  0x58   :  { %p2807_p2 = por %p2806_p1, %p2805_p0 }
  0x5a   :  { %p2808_p3 = pnand %p2807_p2, %p2801_p13 }
  0x5c   :  { %2811 = shalt.err (!%p2808_p3)
}
  0x5d   :  { %127 = dma.hbm_to_vmem [thread:$0]  %s3692_s7, 896, %s3277_s22, [#allocation15], %s3120_s28, %s3120_s28, %s3121_s29  }
  0x5e   :  { %s3124_s27 = smov [#allocation17]   ;;  %s3125_s23 = smov [#allocation20]  }
  0x5f   :  { %s144_s21 = sshll.u32 %s3124_s27, 4  ;;  %s164_s30 = sshll.u32 %s3125_s23, 4  ;;  %s145_s21 = int_to_ptr.vmem [resolvable:$true] %s144_s21  ;;  %s165_s30 = int_to_ptr.vmem [resolvable:$true] %s164_s30 }
  0x60   :  { %s2812_s1 = scalar_lea.hbm %s3694_s9, 16 }
  0x61   :  { %p2813_p4 = scmp.ne.s32.totalorder %s3694_s9, %s2812_s1  ;;  %p2816_p5 = scmp.lt.u32.totalorder %s2812_s1, %s3694_s9 }
  0x63   :  { %p2818_p6 = pnand %p2816_p5, %p2813_p4 }
  0x65   :  { %2821 = shalt.err (!%p2818_p6)
}
  0x66   :  { %s2822_s7 = scalar_lea.vmem %s145_s21, 16  ;;  %s2826_s22 = scalar_lea.vmem %s145_s21, 32 }
  0x67   :  { %p2823_p7 = scmp.ne.s32.totalorder %s145_s21, %s2822_s7  ;;  %p2827_p8 = scmp.lt.s32.totalorder %s145_s21, %s145_s21 }
  0x68   :  { %p2828_p9 = scmp.lt.s32.totalorder %s2826_s22, %s2822_s7 }
  0x6a   :  { %p2829_p10 = por %p2828_p9, %p2827_p8 }
  0x6c   :  { %p2830_p11 = pnand %p2829_p10, %p2823_p7 }
  0x6e   :  { %2833 = shalt.err (!%p2830_p11)
}
  0x6f   :  { %147 = dma.hbm_to_vmem [thread:$0]  %s3694_s9, 16, %s145_s21, [#allocation18]  }
  0x70   :  { %s2834_s27 = scalar_lea.hbm %s3696_s11, 16 }
  0x71   :  { %p2835_p12 = scmp.ne.s32.totalorder %s3696_s11, %s2834_s27  ;;  %p2838_p13 = scmp.lt.u32.totalorder %s2834_s27, %s3696_s11 }
  0x73   :  { %p2840_p0 = pnand %p2838_p13, %p2835_p12 }
  0x75   :  { %2843 = shalt.err (!%p2840_p0)
}
  0x76   :  { %s2844_s24 = scalar_lea.vmem %s165_s30, 16  ;;  %s2848_s18 = scalar_lea.vmem %s165_s30, 32 }
  0x77   :  { %p2845_p1 = scmp.ne.s32.totalorder %s165_s30, %s2844_s24  ;;  %p2849_p2 = scmp.lt.s32.totalorder %s165_s30, %s165_s30 }
  0x78   :  { %p2850_p3 = scmp.lt.s32.totalorder %s2848_s18, %s2844_s24 }
  0x7a   :  { %p2851_p4 = por %p2850_p3, %p2849_p2 }
  0x7c   :  { %p2852_p5 = pnand %p2851_p4, %p2845_p1 }
  0x7e   :  { %2855 = shalt.err (!%p2852_p5)
}
  0x7f   :  { %167 = dma.hbm_to_vmem [thread:$0]  %s3696_s11, 16, %s165_s30, [#allocation21]  }
  0x80   :  { %s3126_s19 = smov [#allocation23]   ;;  %s3127_s7 = smov [#allocation2]  }
  0x81   :  { %s185_s25 = sshll.u32 %s3126_s19, 4  ;;  %s39_s22 = sshll.u32 %s3127_s7, 4  ;;  %s186_s25 = int_to_ptr.vmem [resolvable:$true] %s185_s25  ;;  %s3335_s22 = int_to_ptr.vmem [resolvable:$true] %s39_s22 }
  0x82   :  { %s2856_s5 = scalar_lea.hbm %s3699_s14, 512 }
  0x83   :  { %p2857_p6 = scmp.ne.s32.totalorder %s3699_s14, %s2856_s5  ;;  %p2860_p7 = scmp.lt.u32.totalorder %s2856_s5, %s3699_s14 }
  0x85   :  { %p2862_p8 = pnand %p2860_p7, %p2857_p6 }
  0x87   :  { %2865 = shalt.err (!%p2862_p8)
}
  0x88   :  { %s2866_s11 = scalar_lea.vmem %s186_s25, 512  ;;  %p2871_p10 = scmp.lt.s32.totalorder %s186_s25, %s186_s25 }
  0x89   :  { %p2867_p9 = scmp.ne.s32.totalorder %s186_s25, %s2866_s11  ;;  %p2872_p11 = scmp.lt.s32.totalorder %s2866_s11, %s2866_s11 }
  0x8b   :  { %p2873_p12 = por %p2872_p11, %p2871_p10 }
  0x8d   :  { %p2874_p13 = pnand %p2873_p12, %p2867_p9 }
  0x8f   :  { %2877 = shalt.err (!%p2874_p13)
}
  0x90   :  { %191 = dma.hbm_to_vmem [thread:$0]  %s3699_s14, 512, %s186_s25, [#allocation24], %s3120_s28, %s3120_s28, %s3121_s29  }
  0x91   :  { %s3718_s18 = sld [smem:[#allocation39_spill]] }
  0x97   :  { %s2878_s9 = scalar_lea.hbm %s3718_s18, 256 }
  0x98   :  { %p2879_p0 = scmp.ne.s32.totalorder %s3718_s18, %s2878_s9  ;;  %p2882_p1 = scmp.lt.u32.totalorder %s2878_s9, %s3718_s18 }
  0x9a   :  { %p2884_p2 = pnand %p2882_p1, %p2879_p0 }
  0x9c   :  { %2887 = shalt.err (!%p2884_p2)
}
  0x9d   :  { %s2888_s26 = scalar_lea.vmem %s3335_s22, 256  ;;  %p2893_p4 = scmp.lt.s32.totalorder %s3335_s22, %s3335_s22 }
  0x9e   :  { %p2889_p3 = scmp.ne.s32.totalorder %s3335_s22, %s2888_s26  ;;  %p2894_p5 = scmp.lt.s32.totalorder %s2888_s26, %s2888_s26 }
  0xa0   :  { %p2895_p6 = por %p2894_p5, %p2893_p4 }
  0xa2   :  { %p2896_p7 = pnand %p2895_p6, %p2889_p3 }
  0xa4   :  { %2899 = shalt.err (!%p2896_p7)
}
  0xa5   :  { %45 = dma.hbm_to_vmem [thread:$0]  %s3718_s18, 256, %s3335_s22, [#allocation3], %s3120_s28, %s3120_s28, %s3121_s29  }
  0xa6   :  { %s3128_s5 = smov [#allocation7]   ;;  %s3129_s27 = smov [#allocation10]  }
  0xa7   :  { %s63_s20 = sshll.u32 %s3128_s5, 4  ;;  %s87_s23 = sshll.u32 %s3129_s27, 4  ;;  %s64_s20 = int_to_ptr.vmem [resolvable:$true] %s63_s20  ;;  %s3372_s23 = int_to_ptr.vmem [resolvable:$true] %s87_s23 }
  0xa8   :  { %s3719_s30 = sld [smem:[#allocation41_spill]] }
  0xae   :  { %s2900_s0 = scalar_lea.hbm %s3719_s30, 256 }
  0xaf   :  { %p2901_p8 = scmp.ne.s32.totalorder %s3719_s30, %s2900_s0  ;;  %p2904_p9 = scmp.lt.u32.totalorder %s2900_s0, %s3719_s30 }
  0xb1   :  { %p2906_p10 = pnand %p2904_p9, %p2901_p8 }
  0xb3   :  { %2909 = shalt.err (!%p2906_p10)
}
  0xb4   :  { %s2910_s22 = scalar_lea.vmem %s64_s20, 256  ;;  %p2915_p12 = scmp.lt.s32.totalorder %s64_s20, %s64_s20 }
  0xb5   :  { %p2911_p11 = scmp.ne.s32.totalorder %s64_s20, %s2910_s22  ;;  %p2916_p13 = scmp.lt.s32.totalorder %s2910_s22, %s2910_s22 }
  0xb7   :  { %p2917_p0 = por %p2916_p13, %p2915_p12 }
  0xb9   :  { %p2918_p1 = pnand %p2917_p0, %p2911_p11 }
  0xbb   :  { %2921 = shalt.err (!%p2918_p1)
}
  0xbc   :  { %69 = dma.hbm_to_vmem [thread:$0]  %s3719_s30, 256, %s64_s20, [#allocation6], %s3120_s28, %s3120_s28, %s3121_s29  }
  0xbd   :  { %s2922_s26 = scalar_lea.hbm %s3689_s4, 896 }
  0xbe   :  { %p2923_p2 = scmp.ne.s32.totalorder %s3689_s4, %s2922_s26  ;;  %p2926_p3 = scmp.lt.u32.totalorder %s2922_s26, %s3689_s4 }
  0xc0   :  { %p2928_p4 = pnand %p2926_p3, %p2923_p2 }
  0xc2   :  { %2931 = shalt.err (!%p2928_p4)
}
  0xc3   :  { %s2932_s2 = scalar_lea.vmem %s3372_s23, 896  ;;  %p2937_p6 = scmp.lt.s32.totalorder %s3372_s23, %s3372_s23 }
  0xc4   :  { %p2933_p5 = scmp.ne.s32.totalorder %s3372_s23, %s2932_s2  ;;  %p2938_p7 = scmp.lt.s32.totalorder %s2932_s2, %s2932_s2 }
  0xc6   :  { %p2939_p8 = por %p2938_p7, %p2937_p6 }
  0xc8   :  { %p2940_p9 = pnand %p2939_p8, %p2933_p5 }
  0xca   :  { %2943 = shalt.err (!%p2940_p9)
}
  0xcb   :  { %93 = dma.hbm_to_vmem [thread:$0]  %s3689_s4, 896, %s3372_s23, [#allocation9], %s3120_s28, %s3120_s28, %s3121_s29  }
  0xcc   :  { %s3130_s30 = smov [#allocation13]   ;;  %s3131_s1 = smov [#allocation16]  }
  0xcd   :  { %s109_s0 = sshll.u32 %s3130_s30, 4  ;;  %s134_s24 = sshll.u32 %s3131_s1, 4  ;;  %s110_s0 = int_to_ptr.vmem [resolvable:$true] %s109_s0  ;;  %s135_s24 = int_to_ptr.vmem [resolvable:$true] %s134_s24 }
  0xce   :  { %s2944_s22 = scalar_lea.hbm %s3691_s6, 896 }
  0xcf   :  { %p2945_p10 = scmp.ne.s32.totalorder %s3691_s6, %s2944_s22  ;;  %p2948_p11 = scmp.lt.u32.totalorder %s2944_s22, %s3691_s6 }
  0xd1   :  { %p2950_p12 = pnand %p2948_p11, %p2945_p10 }
  0xd3   :  { %2953 = shalt.err (!%p2950_p12)
}
  0xd4   :  { %s2954_s4 = scalar_lea.vmem %s110_s0, 896  ;;  %p2959_p0 = scmp.lt.s32.totalorder %s110_s0, %s110_s0 }
  0xd5   :  { %p2955_p13 = scmp.ne.s32.totalorder %s110_s0, %s2954_s4  ;;  %p2960_p1 = scmp.lt.s32.totalorder %s2954_s4, %s2954_s4 }
  0xd7   :  { %p2961_p2 = por %p2960_p1, %p2959_p0 }
  0xd9   :  { %p2962_p3 = pnand %p2961_p2, %p2955_p13 }
  0xdb   :  { %2965 = shalt.err (!%p2962_p3)
}
  0xdc   :  { %115 = dma.hbm_to_vmem [thread:$0]  %s3691_s6, 896, %s110_s0, [#allocation12], %s3120_s28, %s3120_s28, %s3121_s29  }
  0xdd   :  { %s2966_s5 = scalar_lea.hbm %s3693_s8, 16 }
  0xde   :  { %p2967_p4 = scmp.ne.s32.totalorder %s3693_s8, %s2966_s5  ;;  %p2970_p5 = scmp.lt.u32.totalorder %s2966_s5, %s3693_s8 }
  0xe0   :  { %p2972_p6 = pnand %p2970_p5, %p2967_p4 }
  0xe2   :  { %2975 = shalt.err (!%p2972_p6)
}
  0xe3   :  { %s2976_s30 = scalar_lea.vmem %s135_s24, 16  ;;  %s2980_s1 = scalar_lea.vmem %s135_s24, 32 }
  0xe4   :  { %p2977_p7 = scmp.ne.s32.totalorder %s135_s24, %s2976_s30  ;;  %p2981_p8 = scmp.lt.s32.totalorder %s135_s24, %s135_s24 }
  0xe5   :  { %p2982_p9 = scmp.lt.s32.totalorder %s2980_s1, %s2976_s30 }
  0xe7   :  { %p2983_p10 = por %p2982_p9, %p2981_p8 }
  0xe9   :  { %p2984_p11 = pnand %p2983_p10, %p2977_p7 }
  0xeb   :  { %2987 = shalt.err (!%p2984_p11)
}
  0xec   :  { %137 = dma.hbm_to_vmem [thread:$0]  %s3693_s8, 16, %s135_s24, [#allocation15]  }
  0xed   :  { %s3132_s9 = smov [#allocation19]   ;;  %s3133_s22 = smov [#allocation22]  }
  0xee   :  { %s154_s21 = sshll.u32 %s3132_s9, 4  ;;  %s174_s18 = sshll.u32 %s3133_s22, 4  ;;  %s155_s21 = int_to_ptr.vmem [resolvable:$true] %s154_s21  ;;  %s175_s18 = int_to_ptr.vmem [resolvable:$true] %s174_s18 }
  0xef   :  { %s2988_s3 = scalar_lea.hbm %s3695_s10, 16 }
  0xf0   :  { %p2989_p12 = scmp.ne.s32.totalorder %s3695_s10, %s2988_s3  ;;  %p2992_p13 = scmp.lt.u32.totalorder %s2988_s3, %s3695_s10 }
  0xf2   :  { %p2994_p0 = pnand %p2992_p13, %p2989_p12 }
  0xf4   :  { %2997 = shalt.err (!%p2994_p0)
}
  0xf5   :  { %s2998_s8 = scalar_lea.vmem %s155_s21, 16  ;;  %s3002_s24 = scalar_lea.vmem %s155_s21, 32 }
  0xf6   :  { %p2999_p1 = scmp.ne.s32.totalorder %s155_s21, %s2998_s8  ;;  %p3003_p2 = scmp.lt.s32.totalorder %s155_s21, %s155_s21 }
  0xf7   :  { %p3004_p3 = scmp.lt.s32.totalorder %s3002_s24, %s2998_s8 }
  0xf9   :  { %p3005_p4 = por %p3004_p3, %p3003_p2 }
  0xfb   :  { %p3006_p5 = pnand %p3005_p4, %p2999_p1 }
  0xfd   :  { %3009 = shalt.err (!%p3006_p5)
}
  0xfe   :  { %157 = dma.hbm_to_vmem [thread:$0]  %s3695_s10, 16, %s155_s21, [#allocation18]  }
  0xff   :  { %s3010_s20 = scalar_lea.hbm %s3697_s12, 16 }
 0x100   :  { %p3011_p6 = scmp.ne.s32.totalorder %s3697_s12, %s3010_s20  ;;  %p3014_p7 = scmp.lt.u32.totalorder %s3010_s20, %s3697_s12 }
 0x102   :  { %p3016_p8 = pnand %p3014_p7, %p3011_p6 }
 0x104   :  { %3019 = shalt.err (!%p3016_p8)
}
 0x105   :  { %s3020_s0 = scalar_lea.vmem %s175_s18, 16  ;;  %s3024_s9 = scalar_lea.vmem %s175_s18, 32 }
 0x106   :  { %p3021_p9 = scmp.ne.s32.totalorder %s175_s18, %s3020_s0  ;;  %p3025_p10 = scmp.lt.s32.totalorder %s175_s18, %s175_s18 }
 0x107   :  { %p3026_p11 = scmp.lt.s32.totalorder %s3024_s9, %s3020_s0 }
 0x109   :  { %p3027_p12 = por %p3026_p11, %p3025_p10 }
 0x10b   :  { %p3028_p13 = pnand %p3027_p12, %p3021_p9 }
 0x10d   :  { %3031 = shalt.err (!%p3028_p13)
}
 0x10e   :  { %177 = dma.hbm_to_vmem [thread:$0]  %s3697_s12, 16, %s175_s18, [#allocation21]  }
 0x10f   :  { %s3134_s22 = smov [#allocation25]   ;;  %s3135_s7 = smov [#allocation26]  }
 0x110   :  { %s197_s19 = sshll.u32 %s3134_s22, 4  ;;  %s210_s3 = sshll.u32 %s3135_s7, 4  ;;  %s198_s19 = int_to_ptr.vmem [resolvable:$true] %s197_s19  ;;  %s211_s3 = int_to_ptr.vmem [resolvable:$true] %s210_s3 }
 0x111   :  { %s3032_s26 = scalar_lea.hbm %s3700_s15, 512 }
 0x112   :  { %p3033_p0 = scmp.ne.s32.totalorder %s3700_s15, %s3032_s26  ;;  %p3036_p1 = scmp.lt.u32.totalorder %s3032_s26, %s3700_s15 }
 0x114   :  { %p3038_p2 = pnand %p3036_p1, %p3033_p0 }
 0x116   :  { %3041 = shalt.err (!%p3038_p2)
}
 0x117   :  { %s3042_s12 = scalar_lea.vmem %s198_s19, 512  ;;  %p3047_p4 = scmp.lt.s32.totalorder %s198_s19, %s198_s19 }
 0x118   :  { %p3043_p3 = scmp.ne.s32.totalorder %s198_s19, %s3042_s12  ;;  %p3048_p5 = scmp.lt.s32.totalorder %s3042_s12, %s3042_s12 }
 0x11a   :  { %p3049_p6 = por %p3048_p5, %p3047_p4 }
 0x11c   :  { %p3050_p7 = pnand %p3049_p6, %p3043_p3 }
 0x11e   :  { %3053 = shalt.err (!%p3050_p7)
}
 0x11f   :  { %203 = dma.hbm_to_vmem [thread:$0]  %s3700_s15, 512, %s198_s19, [#allocation24], %s3120_s28, %s3120_s28, %s3121_s29  }
 0x120   :  { %s3054_s20 = scalar_lea.hbm %s3701_s16, 16 }
 0x121   :  { %p3055_p8 = scmp.ne.s32.totalorder %s3701_s16, %s3054_s20  ;;  %p3058_p9 = scmp.lt.u32.totalorder %s3054_s20, %s3701_s16 }
 0x123   :  { %p3060_p10 = pnand %p3058_p9, %p3055_p8 }
 0x125   :  { %3063 = shalt.err (!%p3060_p10)
}
 0x126   :  { %s3064_s0 = scalar_lea.vmem %s211_s3, 16  ;;  %s3068_s9 = scalar_lea.vmem %s211_s3, 32 }
 0x127   :  { %p3065_p11 = scmp.ne.s32.totalorder %s211_s3, %s3064_s0  ;;  %p3069_p12 = scmp.lt.s32.totalorder %s211_s3, %s211_s3 }
 0x128   :  { %p3070_p13 = scmp.lt.s32.totalorder %s3068_s9, %s3064_s0 }
 0x12a   :  { %p3071_p0 = por %p3070_p13, %p3069_p12 }
 0x12c   :  { %p3072_p1 = pnand %p3071_p0, %p3065_p11 }
 0x12e   :  { %3075 = shalt.err (!%p3072_p1)
}
 0x12f   :  { %213 = dma.hbm_to_vmem [thread:$0]  %s3701_s16, 16, %s211_s3, [#allocation27]  }
 0x130   :  { %3098 = dma.done.wait [#allocation3], 256  }
 0x131   :  { %3099 = vsyncadd [#allocation3], 4294967040 }
 0x132   :  { %3100 = dma.done.wait [#allocation6], 512  }
 0x133   :  { %3101 = vsyncadd [#allocation6], 4294966784 }
 0x134   :  { %3102 = dma.done.wait [#allocation9], 1792  }
 0x135   :  { %3103 = vsyncadd [#allocation9], 4294965504 }
 0x136   :  { %3104 = dma.done.wait [#allocation12], 912  }
 0x137   :  { %3105 = vsyncadd [#allocation12], 4294966384 }
 0x138   :  { %3106 = dma.done.wait [#allocation15], 912  }
 0x139   :  { %3107 = vsyncadd [#allocation15], 4294966384 }
 0x13a   :  { %3108 = dma.done.wait [#allocation18], 32  }
 0x13b   :  { %3109 = vsyncadd [#allocation18], 4294967264 }
 0x13c   :  { %3110 = dma.done.wait [#allocation21], 32  }
 0x13d   :  { %3111 = vsyncadd [#allocation21], 4294967264 }
 0x13e   :  { %3112 = dma.done.wait [#allocation24], 1024  }
 0x13f   :  { %3113 = vsyncadd [#allocation24], 4294966272 }
 0x140   :  { %3114 = dma.done.wait [#allocation27], 16  }
 0x141   :  { %3115 = vsyncadd [#allocation27], 4294967280  ;;  %v279_v0 = vld [vmem:[#allocation10] sm:$0xff]  ;;  %v280_v1 = vld [vmem:[#allocation10 + $0x8] sm:$0xff]  ;;  %vm286_vm0 = vcmask 408576   ;;  %vm293_vm1 = vcmask 1041408  }
 0x142   :  { %v472_v2 = vld [vmem:[#allocation14] sm:$0xff]  ;;  %v2592_v3 = vpack.c.bf16 %v280_v1, %v279_v0  ;;  %v473_v4 = vld [vmem:[#allocation14 + $0x8] sm:$0xff]  ;;  %v474_v9 = vld [vmem:[#allocation14 + $0x10] sm:$0xff]  ;;  %v3136_v44 = vmov 0.0   ;;  %vm3137_vm2 = vmmov 0   ;;  %vm644_vm3 = vcmask 818176  }
 0x143   :  { %v281_v5 = vld [vmem:[#allocation10 + $0x10] sm:$0xff]  ;;  %v282_v6 = vld [vmem:[#allocation10 + $0x18] sm:$0xff]  ;;  %v2616_v7 = vpack.c.bf16 %v473_v4, %v472_v2  ;;  %v283_v11 = vld [vmem:[#allocation10 + $0x20] sm:$0xff]  ;;  %vm797_vm4 = vcmask 64512   ;;  %vm1117_vm5 = vcmask 261120   ;;  %vm1267_vm6 = vcmask 57344  }
 0x144   :  { %v2596_v8 = vpack.c.bf16 %v282_v6, %v281_v5  ;;  %v475_v10 = vld [vmem:[#allocation14 + $0x18] sm:$0xff]  ;;  %2593 = vmatprep.subr.bf16.mxu0 %v2592_v3  ;;  %v476_v14 = vld [vmem:[#allocation14 + $0x20] sm:$0xff]  ;;  %v477_v15 = vld [vmem:[#allocation14 + $0x28] sm:$0xff]  ;;  %vm1917_vm7 = vcmask 1041409   ;;  %s3139_s5 = smov [#allocation28]  }
 0x145   :  { %v2620_v12 = vpack.c.bf16 %v475_v10, %v474_v9  ;;  %v284_v13 = vld [vmem:[#allocation10 + $0x28] sm:$0xff]  ;;  %2617 = vmatprep.subr.bf16.mxu1 %v2616_v7  ;;  %2595 = vmatpush3.bf16.msra.mxu0 %v2592_v3  ;;  %v3487_v16 = vld [vmem:[#allocation7] sm:$0xff]  ;;  %v2624_v18 = vpack.c.bf16 %v477_v15, %v476_v14  ;;  %v285_v19 = vld [vmem:[#allocation10 + $0x30] sm:$0x3]  ;;  %s2247_s27 = sshll.u32 %s3139_s5, 4  ;;  %s2248_s27 = int_to_ptr.vmem [resolvable:$true] %s2247_s27 }
 0x146   :  { %2619 = vmatpush3.bf16.msra.mxu1 %v2616_v7  ;;  %2597 = vmatprep.subr.bf16.mxu0 %v2596_v8  ;;  %v2600_v17 = vpack.c.bf16 %v284_v13, %v283_v11  ;;  %v272_v20 = vld [vmem:[#allocation8] sm:$0xff]  ;;  %v273_v21 = vld [vmem:[#allocation8 + $0x8] sm:$0xff]  ;;  %v478_v22 = vld [vmem:[#allocation14 + $0x30] sm:$0x3]  ;;  %s3076_s2 = scalar_lea.vmem %s2248_s27, 32  ;;  %p3081_p3 = scmp.lt.s32.totalorder %s2248_s27, %s2248_s27 }
 0x147   :  { %2621 = vmatprep.subr.bf16.mxu1 %v2620_v12  ;;  %2414 = vmatprep.mubr.msk.f32.mxu0 %vm286_vm0, %v3487_v16  ;;  %v465_v23 = vld [vmem:[#allocation13] sm:$0xff]  ;;  %v466_v24 = vld [vmem:[#allocation13 + $0x8] sm:$0xff]  ;;  %v2604_v25 = vpack.c.bf16 %v273_v21, %v272_v20  ;;  %v467_v29 = vld [vmem:[#allocation13 + $0x10] sm:$0xff]  ;;  %p3077_p2 = scmp.ne.s32.totalorder %s2248_s27, %s3076_s2  ;;  %p3082_p4 = scmp.lt.s32.totalorder %s3076_s2, %s3076_s2 }
 0x148   :  { %2448 = vmatprep.mubr.msk.f32.mxu1 %vm286_vm0, %v3487_v16  ;;  %v274_v26 = vld [vmem:[#allocation8 + $0x10] sm:$0xff]  ;;  %v275_v27 = vld [vmem:[#allocation8 + $0x18] sm:$0xff]  ;;  %v2628_v28 = vpack.c.bf16 %v466_v24, %v465_v23  ;;  %v276_v34 = vld [vmem:[#allocation8 + $0x20] sm:$0xff] }
 0x149   :  { %2599 = vmatpush3.bf16.msra.mxu0 %v2596_v8  ;;  %v468_v30 = vld [vmem:[#allocation13 + $0x18] sm:$0xff]  ;;  %v3495_v31 = vld [vmem:[#allocation7 + $0x8] sm:$0xff]  ;;  %v2608_v32 = vpack.c.bf16 %v275_v27, %v274_v26  ;;  %v268_v38 = vld [vmem:[#allocation5] sm:$0xff]  ;;  %p3083_p5 = por %p3082_p4, %p3081_p3 }
 0x14a   :  { %2623 = vmatpush3.bf16.msra.mxu1 %v2620_v12  ;;  %2601 = vmatprep.subr.bf16.mxu0 %v2600_v17  ;;  %v2632_v33 = vpack.c.bf16 %v468_v30, %v467_v29  ;;  %v277_v35 = vld [vmem:[#allocation8 + $0x28] sm:$0xff]  ;;  %v469_v36 = vld [vmem:[#allocation13 + $0x20] sm:$0xff]  ;;  %v470_v37 = vld [vmem:[#allocation13 + $0x28] sm:$0xff] }
 0x14b   :  { %2625 = vmatprep.subr.bf16.mxu1 %v2624_v18  ;;  %v2612_v39 = vpack.c.bf16 %v277_v35, %v276_v34  ;;  %v2636_v40 = vpack.c.bf16 %v470_v37, %v469_v36  ;;  %v278_v41 = vld [vmem:[#allocation8 + $0x30] sm:$0x3]  ;;  %v471_v42 = vld [vmem:[#allocation13 + $0x30] sm:$0x3]  ;;  %v269_v43 = vld [vmem:[#allocation5 + $0x8] sm:$0xff]  ;;  %p3084_p6 = pnand %p3083_p5, %p3077_p2 }
 0x14c   :  { %v2270_v45 = vld [vmem:[#allocation11] ss:$0 sm:$0xff]  ;;  %v2277_v49 = vld [vmem:[#allocation16] ss:$0 sm:$0xff]  ;;  %v820_v55 = vld [vmem:[#allocation17] sm:$0x1] }
 0x14d   :  { %2603 = vmatpush3.bf16.msra.mxu0 %v2600_v17  ;;  %v3550_v20 = vld [vmem:[#allocation2] sm:$0xff]  ;;  %v1116_v21 = vld [vmem:[#allocation19] sm:$0x1]  ;;  %v1437_v36 = vld [vmem:[#allocation22] sm:$0x1] }
 0x14e   :  { %2627 = vmatpush3.bf16.msra.mxu1 %v2624_v18  ;;  %2412 = vmatprep.subr.msk.mxu0 %vm293_vm1, %v285_v19  ;;  %v3543_v18 = vld [vmem:[#allocation2 + $0x8] sm:$0xff] }
 0x14f   :  { %2446 = vmatprep.subr.msk.mxu1 %vm293_vm1, %v478_v22 }
 0x151   :  { %2413 = vmatpush3.msk.msra.mxu0 %vm293_vm1, %v285_v19 }
 0x152   :  { %2447 = vmatpush3.msk.msra.mxu1 %vm293_vm1, %v478_v22  ;;  %2605 = vmatprep.subr.bf16.mxu0 %v2604_v25 }
 0x153   :  { %2629 = vmatprep.subr.bf16.mxu1 %v2628_v28  ;;  %2415 = vmatmul.mubr.msk.f32.vlgmr.msra.gmra.mrb[0].mxu0 %vm286_vm0, %v3495_v31 }
 0x154   :  { %2607 = vmatpush3.bf16.msra.mxu0 %v2604_v25  ;;  %2449 = vmatmul.mubr.msk.f32.vlgmr.msra.gmra.mrb[0].mxu1 %vm286_vm0, %v3495_v31 }
 0x155   :  { %2631 = vmatpush3.bf16.msra.mxu1 %v2628_v28  ;;  %2609 = vmatprep.subr.bf16.mxu0 %v2608_v32 }
 0x156   :  { %2633 = vmatprep.subr.bf16.mxu1 %v2632_v33  ;;  %2431 = vmatprep.mubr.msk.f32.mxu0 %vm286_vm0, %v268_v38 }
 0x157   :  { %2465 = vmatprep.mubr.msk.f32.mxu1 %vm286_vm0, %v268_v38 }
 0x158   :  { %2611 = vmatpush3.bf16.msra.mxu0 %v2608_v32 }
 0x159   :  { %2635 = vmatpush3.bf16.msra.mxu1 %v2632_v33  ;;  %2613 = vmatprep.subr.bf16.mxu0 %v2612_v39 }
 0x15a   :  { %2637 = vmatprep.subr.bf16.mxu1 %v2636_v40 }
 0x15c   :  { %2615 = vmatpush3.bf16.msra.mxu0 %v2612_v39 }
 0x15d   :  { %2639 = vmatpush3.bf16.msra.mxu1 %v2636_v40  ;;  %2429 = vmatprep.subr.msk.mxu0 %vm293_vm1, %v278_v41 }
 0x15e   :  { %2463 = vmatprep.subr.msk.mxu1 %vm293_vm1, %v471_v42 }
 0x160   :  { %2430 = vmatpush3.msk.msra.mxu0 %vm293_vm1, %v278_v41 }
 0x161   :  { %2464 = vmatpush3.msk.msra.mxu1 %vm293_vm1, %v471_v42  ;;  %2432 = vmatmul.mubr.msk.f32.vlgmr.msra.gmra.mrb[0].mxu0 %vm286_vm0, %v269_v43 }
 0x162   :  { %2466 = vmatmul.mubr.msk.f32.vlgmr.msra.gmra.mrb[0].mxu1 %vm286_vm0, %v269_v43  ;;  %2473 = vmatprep.subr.mxu1 %v3136_v44 }
 0x163   :  { %2468 = vmatprep.subr.mxu0 %v3136_v44  ;;  %2475 = vmatprep.mubr.msk.f32.mxu1 %vm3137_vm2, %v3136_v44 }
 0x164   :  { %2470 = vmatprep.mubr.msk.f32.mxu0 %vm3137_vm2, %v3136_v44 }
 0x234   :  { %v2433_v46 = vpop.f32.mrb[0].mxu0 }
 0x235   :  { %v464_v47 = vadd.f32 %v2433_v46, %v2270_v45  ;;  %v2467_v48 = vpop.f32.mrb[0].mxu1  ;;  %v447_v50 = vpop.f32.mrb[1].mxu0 }
 0x236   :  { %v463_v51 = vadd.f32 %v2270_v45, %v447_v50  ;;  %v626_v52 = vpop.f32.mrb[1].mxu1  ;;  %v643_v53 = vadd.f32 %v2467_v48, %v2277_v49 }
 0x237   :  { %2474 = vmatpush3.xpose.msk.msra.mxu1 %vm644_vm3, %v464_v47  ;;  %v642_v54 = vadd.f32 %v2277_v49, %v626_v52 }
 0x238   :  { %2469 = vmatpush3.xpose.msk.msra.mxu0 %vm644_vm3, %v463_v51  ;;  %2483 = vmatprep.subr.mxu1 %v3136_v44 }
 0x239   :  { %2478 = vmatprep.subr.mxu0 %v3136_v44 }
 0x23a   :  { %2476 = vmatmul.mubr.msk.f32.vlgmr.msra.gmra.mrb[2].mxu1 %vm644_vm3, %v643_v53 }
 0x23b   :  { %2471 = vmatmul.mubr.msk.f32.vlgmr.msra.gmra.mrb[2].mxu0 %vm644_vm3, %v642_v54  ;;  %2484 = vmatpush3.xpose.msk.msra.mxu1 %vm644_vm3, %v464_v47 }
 0x23c   :  { %2479 = vmatpush3.xpose.msk.msra.mxu0 %vm644_vm3, %v463_v51  ;;  %2485 = vmatprep.mubr.msk.f32.mxu1 %vm3137_vm2, %v3136_v44 }
 0x23d   :  { %2480 = vmatprep.mubr.msk.f32.mxu0 %vm3137_vm2, %v3136_v44  ;;  %2493 = vmatprep.subr.mxu1 %v3136_v44 }
 0x23e   :  { %2488 = vmatprep.subr.mxu0 %v3136_v44  ;;  %2486 = vmatmul.mubr.msk.f32.vlgmr.msra.gmra.mrb[4].mxu1 %vm644_vm3, %v820_v55 }
 0x23f   :  { %2481 = vmatmul.mubr.msk.f32.vlgmr.msra.gmra.mrb[4].mxu0 %vm644_vm3, %v820_v55  ;;  %2495 = vmatprep.mubr.msk.f32.mxu1 %vm3137_vm2, %v3136_v44 }
 0x240   :  { %2490 = vmatprep.mubr.msk.f32.mxu0 %vm3137_vm2, %v3136_v44 }
 0x30d   :  { %v793_v56 = vpop.f32.mrb[2].mxu1 }
 0x30e   :  { %v717_v57 = vpop.f32.mrb[2].mxu0  ;;  %v2477_v58 = vpop.f32.mrb[3].mxu1  ;;  %v801_v59 = vsel %vm797_vm4, %v793_v56, -inf }
 0x30f   :  { %802 = vmax.xlane.f32.xlu0 %v801_v59  ;;  %v2472_v60 = vpop.f32.mrb[3].mxu0  ;;  %v798_v61 = vsel %vm797_vm4, %v717_v57, -inf }
 0x310   :  { %v3138_v60 = vmov 0.0|0.0  }
 0x311   :  { %v960_v8 = vpop.f32.mrb[4].mxu1 }
 0x312   :  { %v2487_v9 = vpop.f32.mrb[5].mxu1  ;;  %v890_v10 = vpop.f32.mrb[4].mxu0 }
 0x313   :  { %799 = vmax.xlane.f32.xlu0 %v798_v61  ;;  %v2482_v11 = vpop.f32.mrb[5].mxu0  ;;  %v1899_v61 = vsel %vm1117_vm5, %v3543_v18, -inf }
 0x314   :  { %v1912_v11 = vld [vmem:[#allocation23 + $0x10] sm:$0xff] }
 0x39c   :  { %v803_v62 = vpop.xlane.xlu0 %802 }
 0x39d   :  { %v805_v63 = vsub.f32 %v793_v56, %v803_v62  ;;  %v1892_v62 = vsel %vm1117_vm5, %v3550_v20, -inf }
 0x39f   :  { %v808_v0 = vmul.f32 1.442695, %v805_v63  ;;  %v1900_v63 = vrot.slane %v1899_v61, 4 }
 0x3a0   :  { %v800_v1 = vpop.xlane.xlu0 %799 }
 0x3a1   :  { %2698 = vpow2.f32 %v808_v0  ;;  %v804_v2 = vsub.f32 %v717_v57, %v800_v1  ;;  %v1893_v0 = vrot.slane %v1892_v62, 4  ;;  %v1901_v1 = vmax.f32 %v1899_v61, %v1900_v63  ;;  %v2309_v63 = vld [vmem:[#allocation26] ss:$0 sm:$0xff] }
 0x3a3   :  { %v806_v3 = vmul.f32 1.442695, %v804_v2  ;;  %v1894_v2 = vmax.f32 %v1892_v62, %v1893_v0 }
 0x3a5   :  { %2700 = vpow2.f32 %v806_v3  ;;  %v1910_v3 = vld [vmem:[#allocation23] sm:$0xff]  ;;  %v1895_v9 = vrot.slane %v1894_v2, 2 }
 0x3ab   :  { %v2699_v4 = vpop.eup %2698 }
 0x3ac   :  { %v813_v5 = vsel %vm797_vm4, %v2699_v4, 0.0 }
 0x3ad   :  { %814 = vadd.xlane.f32.xlu1 %v813_v5 }
 0x3af   :  { %v2701_v6 = vpop.eup %2700 }
 0x3b0   :  { %v810_v7 = vsel %vm797_vm4, %v2701_v6, 0.0 }
 0x3b1   :  { %811 = vadd.xlane.f32.xlu1 %v810_v7  ;;  %v1907_v7 = vld [vmem:[%s3698_s13 + $0x8] sm:$0xff] }
 0x43a   :  { %v815_v12 = vpop.xlane.xlu1 %814 }
 0x43b   :  { %2702 = vrcp.f32 %v815_v12  ;;  %v1913_v12 = vld [vmem:[#allocation23 + $0x18] sm:$0xff] }
 0x43e   :  { %v812_v13 = vpop.xlane.xlu1 %811 }
 0x43f   :  { %2704 = vrcp.f32 %v812_v13  ;;  %v1896_v13 = vmax.f32 %v1894_v2, %v1895_v9 }
 0x445   :  { %v2703_v14 = vpop.eup %2702 }
 0x446   :  { %v819_v15 = vmul.f32 %v2703_v14, %v2699_v4  ;;  %v1911_v4 = vld [vmem:[#allocation23 + $0x8] sm:$0xff] }
 0x447   :  { %v2641_v5 = vpack.c.bf16 %v1911_v4, %v1910_v3 }
 0x448   :  { %2494 = vmatpush3.xpose.msk.msra.mxu1 %vm797_vm4, %v819_v15  ;;  %v2644_v15 = vpack.c.bf16 %v1913_v12, %v1912_v11 }
 0x449   :  { %v2705_v17 = vpop.eup %2704  ;;  %2503 = vmatprep.subr.mxu1 %v3136_v44 }
 0x44a   :  { %v818_v19 = vmul.f32 %v2705_v17, %v2701_v6  ;;  %v1906_v6 = vld [vmem:[%s3698_s13] sm:$0xff]  ;;  %v1908_v17 = vld [vmem:[%s3698_s13 + $0x10] sm:$0xff] }
 0x44b   :  { %2496 = vmatmul.mubr.msk.f32.vlgmr.msra.gmra.mrb[6].mxu1 %vm797_vm4, %v960_v8  ;;  %v2647_v8 = vpack.c.bf16 %v1907_v7, %v1906_v6 }
 0x44c   :  { %2489 = vmatpush3.xpose.msk.msra.mxu0 %vm797_vm4, %v818_v19  ;;  %2504 = vmatpush3.xpose.msk.msra.mxu1 %vm1117_vm5, %v3543_v18 }
 0x44d   :  { %2498 = vmatprep.subr.mxu0 %v3136_v44  ;;  %2505 = vmatprep.mubr.msk.f32.mxu1 %vm3137_vm2, %v3136_v44 }
 0x44e   :  { %2513 = vmatprep.subr.mxu1 %v3136_v44 }
 0x44f   :  { %2491 = vmatmul.mubr.msk.f32.vlgmr.msra.gmra.mrb[6].mxu0 %vm797_vm4, %v890_v10  ;;  %v1902_v10 = vrot.slane %v1901_v1, 2 }
 0x450   :  { %2499 = vmatpush3.xpose.msk.msra.mxu0 %vm1117_vm5, %v3550_v20  ;;  %2500 = vmatprep.mubr.msk.f32.mxu0 %vm3137_vm2, %v3136_v44 }
 0x451   :  { %2508 = vmatprep.subr.mxu0 %v3136_v44  ;;  %v1903_v14 = vmax.f32 %v1901_v1, %v1902_v10 }
 0x453   :  { %2506 = vmatmul.mubr.msk.f32.vlgmr.msra.gmra.mrb[6].mxu1 %vm1117_vm5, %v1116_v21 }
 0x454   :  { %2514 = vmatpush3.msra.mxu1 %v3543_v18  ;;  %2515 = vmatprep.mubr.msk.f32.mxu1 %vm3137_vm2, %v3136_v44 }
 0x455   :  { %2523 = vmatprep.subr.mxu1 %v3136_v44 }
 0x457   :  { %2501 = vmatmul.mubr.msk.f32.vlgmr.msra.gmra.mrb[6].mxu0 %vm1117_vm5, %v1116_v21  ;;  %v1904_v21 = vrot.slane %v1903_v14, 1 }
 0x458   :  { %2509 = vmatpush3.msra.mxu0 %v3550_v20  ;;  %2510 = vmatprep.mubr.msk.f32.mxu0 %vm3137_vm2, %v3136_v44 }
 0x459   :  { %2518 = vmatprep.subr.mxu0 %v3136_v44 }
 0x526   :  { %v1263_v22 = vpop.f32.mrb[6].mxu1 }
 0x527   :  { %v2507_v23 = vpop.f32.mrb[7].mxu1  ;;  %v1271_v24 = vsel %vm1267_vm6, %v1263_v22, -inf }
 0x528   :  { %1272 = vmax.xlane.f32.xlu0 %v1271_v24  ;;  %v1905_v23 = vmax.f32 %v1903_v14, %v1904_v21 }
 0x52a   :  { %v1190_v25 = vpop.f32.mrb[6].mxu0 }
 0x52b   :  { %v2502_v26 = vpop.f32.mrb[7].mxu0  ;;  %v1268_v27 = vsel %vm1267_vm6, %v1190_v25, -inf }
 0x52c   :  { %1269 = vmax.xlane.f32.xlu1 %v1268_v27 }
 0x5b5   :  { %v1273_v28 = vpop.xlane.xlu0 %1272 }
 0x5b6   :  { %v1275_v29 = vsub.f32 %v1263_v22, %v1273_v28 }
 0x5b8   :  { %v1278_v30 = vmul.f32 1.442695, %v1275_v29 }
 0x5b9   :  { %v1270_v32 = vpop.xlane.xlu1 %1269 }
 0x5ba   :  { %2706 = vpow2.f32 %v1278_v30  ;;  %v1274_v33 = vsub.f32 %v1190_v25, %v1270_v32 }
 0x5bc   :  { %v1276_v34 = vmul.f32 1.442695, %v1274_v33 }
 0x5be   :  { %2708 = vpow2.f32 %v1276_v34 }
 0x5c4   :  { %v2707_v35 = vpop.eup %2706 }
 0x5c5   :  { %2516 = vmatmul.mubr.msk.f32.vlgmr.msra.gmra.mrb[8].mxu1 %vm797_vm4, %v2707_v35  ;;  %v1429_v57 = vsel %vm1267_vm6, %v2707_v35, 0.0 }
 0x5c6   :  { %2524 = vmatpush3.xpose.msk.msra.mxu1 %vm286_vm0, %v3495_v31  ;;  %2525 = vmatprep.mubr.msk.f32.mxu1 %vm3137_vm2, %v3136_v44  ;;  %v1436_v31 = vld [vmem:[#allocation20] sm:$0x1] }
 0x5c7   :  { %2533 = vmatprep.subr.mxu1 %v3136_v44 }
 0x5c8   :  { %v2709_v37 = vpop.eup %2708 }
 0x5c9   :  { %2511 = vmatmul.mubr.msk.f32.vlgmr.msra.gmra.mrb[8].mxu0 %vm797_vm4, %v2709_v37  ;;  %2526 = vmatmul.mubr.msk.f32.vlgmr.msra.gmra.mrb[10].mxu1 %vm286_vm0, %v1437_v36  ;;  %v1426_v59 = vsel %vm1267_vm6, %v2709_v37, 0.0 }
 0x5ca   :  { %2519 = vmatpush3.xpose.msk.msra.mxu0 %vm286_vm0, %v3487_v16  ;;  %2520 = vmatprep.mubr.msk.f32.mxu0 %vm3137_vm2, %v3136_v44 }
 0x5cb   :  { %2534 = vmatpush3.xpose.msk.msra.mxu1 %vm1117_vm5, %v3543_v18  ;;  %2528 = vmatprep.subr.mxu0 %v3136_v44 }
 0x5cc   :  { %2535 = vmatprep.mubr.msk.f32.mxu1 %vm3137_vm2, %v3136_v44  ;;  %2543 = vmatprep.subr.mxu1 %v3136_v44 }
 0x5cd   :  { %2521 = vmatmul.mubr.msk.f32.vlgmr.msra.gmra.mrb[10].mxu0 %vm286_vm0, %v1437_v36 }
 0x5ce   :  { %2529 = vmatpush3.xpose.msk.msra.mxu0 %vm1117_vm5, %v3550_v20  ;;  %2530 = vmatprep.mubr.msk.f32.mxu0 %vm3137_vm2, %v3136_v44 }
 0x5cf   :  { %2538 = vmatprep.subr.mxu0 %v3136_v44 }
 0x5d1   :  { %2536 = vmatmul.mubr.msk.f32.vlgmr.msra.gmra.mrb[10].mxu1 %vm1117_vm5, %v1436_v31 }
 0x5d2   :  { %2544 = vmatpush3.msra.mxu1 %v3543_v18  ;;  %2545 = vmatprep.mubr.msk.f32.mxu1 %vm3137_vm2, %v3136_v44  ;;  %v1909_v18 = vld [vmem:[%s3698_s13 + $0x18] sm:$0xff] }
 0x5d3   :  { %2646 = vmatprep.subr.bf16.mxu1 %v3138_v60  ;;  %v2650_v19 = vpack.c.bf16 %v1909_v18, %v1908_v17 }
 0x5d5   :  { %2531 = vmatmul.mubr.msk.f32.vlgmr.msra.gmra.mrb[10].mxu0 %vm1117_vm5, %v1436_v31 }
 0x5d6   :  { %2539 = vmatpush3.msra.mxu0 %v3550_v20  ;;  %2540 = vmatprep.mubr.msk.f32.mxu0 %vm3137_vm2, %v3136_v44  ;;  %v1897_v20 = vrot.slane %v1896_v13, 1 }
 0x5d7   :  { %2640 = vmatprep.subr.bf16.mxu0 %v3138_v60 }
 0x5d8   :  { %v1898_v22 = vmax.f32 %v1896_v13, %v1897_v20 }
 0x5da   :  { %v1993_v24 = vsel %vm1917_vm7, %v1905_v23, %v1898_v22 }
 0x698   :  { %v3605_v16 = vpop.f32.mrb[8].mxu1 }
 0x699   :  { %v2517_v38 = vpop.f32.mrb[9].mxu1 }
 0x69c   :  { %v3607_v39 = vpop.f32.mrb[8].mxu0 }
 0x69d   :  { %v2512_v40 = vpop.f32.mrb[9].mxu0 }
 0x69e   :  { %v2066_v40 = vld [vmem:[#allocation25] sm:$0xff] }
 0x6a4   :  { %v1720_v41 = vpop.f32.mrb[10].mxu1 }
 0x6a5   :  { %v2537_v42 = vpop.f32.mrb[11].mxu1  ;;  %v1727_v43 = vsel %vm1267_vm6, %v1720_v41, -inf }
 0x6a6   :  { %1728 = vmax.xlane.f32.xlu0 %v1727_v43 }
 0x6a8   :  { %v1650_v45 = vpop.f32.mrb[10].mxu0 }
 0x6a9   :  { %v2532_v46 = vpop.f32.mrb[11].mxu0  ;;  %v1724_v47 = vsel %vm1267_vm6, %v1650_v45, -inf }
 0x6aa   :  { %1725 = vmax.xlane.f32.xlu1 %v1724_v47 }
 0x733   :  { %v1729_v48 = vpop.xlane.xlu0 %1728 }
 0x734   :  { %v1731_v49 = vsub.f32 %v1720_v41, %v1729_v48  ;;  %v2067_v41 = vld [vmem:[#allocation25 + $0x8] sm:$0xff]  ;;  %v2068_v48 = vld [vmem:[#allocation25 + $0x10] sm:$0xff] }
 0x736   :  { %v1734_v50 = vmul.f32 1.442695, %v1731_v49  ;;  %v2069_v49 = vld [vmem:[#allocation25 + $0x18] sm:$0xff] }
 0x737   :  { %v1726_v51 = vpop.xlane.xlu1 %1725 }
 0x738   :  { %2710 = vpow2.f32 %v1734_v50  ;;  %v1730_v52 = vsub.f32 %v1650_v45, %v1726_v51  ;;  %v2656_v50 = vpack.c.bf16 %v2069_v49, %v2068_v48 }
 0x73a   :  { %v1732_v53 = vmul.f32 1.442695, %v1730_v52 }
 0x73c   :  { %2712 = vpow2.f32 %v1732_v53  ;;  %v2156_v53 = vld [vmem:[%s3702_s17] sm:$0xff] }
 0x742   :  { %v2711_v54 = vpop.eup %2710 }
 0x743   :  { %2546 = vmatmul.mubr.msk.f32.vlgmr.msra.gmra.mrb[12].mxu1 %vm797_vm4, %v2711_v54  ;;  %v1885_v55 = vsel %vm1267_vm6, %v2711_v54, 0.0  ;;  %v2157_v54 = vld [vmem:[%s3702_s17 + $0x8] sm:$0xff] }
 0x744   :  { %1886 = vadd.xlane.f32.xlu0 %v1885_v55  ;;  %2567 = vmatprep.mubr.msk.f32.mxu1 %vm3137_vm2, %v3136_v44  ;;  %v2158_v55 = vld [vmem:[%s3702_s17 + $0x10] sm:$0xff] }
 0x745   :  { %2648 = vmatpush3.bf16.msra.mxu1 %v2647_v8 }
 0x746   :  { %v2713_v56 = vpop.eup %2712  ;;  %2649 = vmatprep.subr.bf16.mxu1 %v3138_v60 }
 0x747   :  { %2541 = vmatmul.mubr.msk.f32.vlgmr.msra.gmra.mrb[12].mxu0 %vm797_vm4, %v2713_v56  ;;  %v1882_v58 = vsel %vm1267_vm6, %v2713_v56, 0.0  ;;  %v2159_v56 = vld [vmem:[%s3702_s17 + $0x18] sm:$0xff]  ;;  %s3720_s17 = sld [smem:[#allocation43_spill]] }
 0x748   :  { %1430 = vadd.xlane.f32.xlu0 %v1429_v57  ;;  %1883 = vadd.xlane.f32.xlu1 %v1882_v58  ;;  %v2662_v57 = vpack.c.bf16 %v2159_v56, %v2158_v55 }
 0x749   :  { %2556 = vmatprep.mubr.msk.f32.mxu0 %vm3137_vm2, %v3136_v44  ;;  %2642 = vmatpush3.bf16.msra.mxu0 %v2641_v5 }
 0x74a   :  { %2643 = vmatprep.subr.bf16.mxu0 %v3138_v60  ;;  %2651 = vmatpush3.bf16.msra.mxu1 %v2650_v19 }
 0x74b   :  { %2658 = vmatprep.subr.bf16.mxu1 %v3138_v60 }
 0x74c   :  { %1427 = vadd.xlane.f32.xlu1 %v1426_v59 }
 0x74d   :  { %2645 = vmatpush3.bf16.msra.mxu0 %v2644_v15  ;;  %2568 = vmatmul.mubr.msk.f32.vlgmr.msra.gmra.mrb[14].mxu1 %vm1117_vm5, %v1993_v24  ;;  %v2310_v4 = vld [vmem:[%s3720_s17] ss:$0 sm:$0xff] }
 0x74e   :  { %2652 = vmatprep.subr.bf16.mxu0 %v3138_v60  ;;  %2589 = vmatprep.mubr.msk.f32.mxu1 %vm3137_vm2, %v3136_v44 }
 0x7d1   :  { %v1887_v25 = vpop.xlane.xlu0 %1886 }
 0x7d5   :  { %v1431_v26 = vpop.xlane.xlu0 %1430  ;;  %v1884_v27 = vpop.xlane.xlu1 %1883 }
 0x7d6   :  { %2714 = vrcp.f32 %v1431_v26 }
 0x7d9   :  { %v1428_v28 = vpop.xlane.xlu1 %1427 }
 0x7da   :  { %2716 = vrcp.f32 %v1428_v28 }
 0x7db   :  { %2718 = vrcp.f32 %v1887_v25 }
 0x7dc   :  { %2720 = vrcp.f32 %v1884_v27 }
 0x7e0   :  { %v2715_v29 = vpop.eup %2714 }
 0x7e1   :  { %v1435_v30 = vmul.f32 %v2715_v29, %v3605_v16  ;;  %v2653_v16 = vpack.c.bf16 %v2067_v41, %v2066_v40 }
 0x7e3   :  { %v2072_v34 = vrot.slane %v1435_v30, 7 }
 0x7e4   :  { %v2717_v32 = vpop.eup %2716 }
 0x7e5   :  { %v1434_v33 = vmul.f32 %v2717_v32, %v3607_v39  ;;  %v2719_v36 = vpop.eup %2718 }
 0x7e6   :  { %v2721_v42 = vpop.eup %2720 }
 0x7e7   :  { %v2073_v35 = vsel %vm1917_vm7, %v2072_v34, %v1434_v33 }
 0x816   :  { %v1878_v37 = vpop.f32.mrb[12].mxu1 }
 0x817   :  { %v1891_v31 = vmul.f32 %v2719_v36, %v1878_v37  ;;  %v2547_v38 = vpop.f32.mrb[13].mxu1 }
 0x819   :  { %v1916_v45 = vrot.slane %v1891_v31, 7 }
 0x81a   :  { %v1805_v43 = vpop.f32.mrb[12].mxu0 }
 0x81b   :  { %v1890_v46 = vmul.f32 %v2721_v42, %v1805_v43  ;;  %v2542_v47 = vpop.f32.mrb[13].mxu0 }
 0x81d   :  { %v1918_v39 = vsel %vm1917_vm7, %v1916_v45, %v1890_v46 }
 0x81e   :  { %2557 = vmatmul.mubr.msk.f32.vlgmr.msra.gmra.mrb[14].mxu0 %vm1117_vm5, %v1918_v39 }
 0x81f   :  { %2654 = vmatpush3.bf16.msra.mxu0 %v2653_v16  ;;  %2578 = vmatprep.mubr.msk.f32.mxu0 %vm3137_vm2, %v3136_v44  ;;  %v2659_v44 = vpack.c.bf16 %v2157_v54, %v2156_v53 }
 0x820   :  { %2655 = vmatprep.subr.bf16.mxu0 %v3138_v60  ;;  %v2062_v51 = vpop.f32.mrb[14].mxu1 }
 0x821   :  { %v2569_v52 = vpop.f32.mrb[15].mxu1  ;;  %2660 = vmatpush3.bf16.msra.mxu1 %v2659_v44 }
 0x822   :  { %2661 = vmatprep.subr.bf16.mxu1 %v3138_v60 }
 0x823   :  { %2657 = vmatpush3.bf16.msra.mxu0 %v2656_v50 }
 0x825   :  { %2663 = vmatpush3.bf16.msra.mxu1 %v2662_v57 }
 0x826   :  { %2579 = vmatmul.mubr.msk.f32.vlgmr.msra.gmra.mrb[16].mxu0 %vm1117_vm5, %v2073_v35 }
 0x8f1   :  { %v1987_v58 = vpop.f32.mrb[14].mxu0 }
 0x8f2   :  { %v2063_v59 = vadd.f32 %v2062_v51, %v1987_v58  ;;  %v2558_v61 = vpop.f32.mrb[15].mxu0 }
 0x8f9   :  { %v2142_v62 = vpop.f32.mrb[16].mxu0 }
 0x8fa   :  { %v2146_v0 = vadd.f32 %v2142_v62, %v2063_v59  ;;  %v2580_v1 = vpop.f32.mrb[17].mxu0 }
 0x8fc   :  { %v2154_v2 = vadd.f32 %v2309_v63, %v2146_v0 }
 0x8fe   :  { %2722 = vtanh.f32 %v2154_v2 }
 0x908   :  { %v2723_v3 = vpop.eup %2722 }
 0x909   :  { %2590 = vmatmul.mubr.msk.f32.vlgmr.msra.gmra.mrb[16].mxu1 %vm1117_vm5, %v2723_v3 }
 0x9dc   :  { %v2236_v60 = vpop.f32.mrb[16].mxu1 }
 0x9dd   :  { %v2237_v5 = vadd.f32 %v2310_v4, %v2236_v60  ;;  %v2591_v6 = vpop.f32.mrb[17].mxu1 }
 0x9df   :  { %2240 = vst [vmem:[#allocation28] sm:$0x3] %v2237_v5 }
 0x9e0   :  { %3087 = shalt.err (!%p3084_p6)
}
 0x9e1   :  { %s3721_s30 = sld [smem:[#allocation44_spill]] }
 0x9e7   :  { %s3088_s1 = scalar_lea.hbm %s3721_s30, 32 }
 0x9e8   :  { %p3089_p7 = scmp.ne.s32.totalorder %s3721_s30, %s3088_s1  ;;  %p3092_p8 = scmp.lt.u32.totalorder %s3088_s1, %s3721_s30 }
 0x9ea   :  { %p3094_p9 = pnand %p3092_p8, %p3089_p7 }
 0x9ec   :  { %3097 = shalt.err (!%p3094_p9)
}
 0x9ed   :  { %2250 = dma.vmem_to_hbm [thread:$0]  %s2248_s27, 32, %s3721_s30, [#allocation4]  }
 0x9ee   :  { %3116 = dma.done.wait [#allocation4], 32  }
 0x9ef   :  { %3117 = vsyncadd [#allocation4], 4294967264 }
 0x9f0   :  { %2254 = vsyncpa [#allocation3], 1 }
 0x9f1   :  { %2255 = vsyncpa [#allocation6], 1 }
 0x9f2   :  { %2256 = vsyncpa [#allocation9], 1 }
 0x9f3   :  { %2257 = vsyncpa [#allocation12], 1 }
 0x9f4   :  { %2258 = vsyncpa [#allocation15], 1 }
 0x9f5   :  { %2259 = vsyncpa [#allocation18], 1 }
 0x9f6   :  { %2260 = vsyncpa [#allocation21], 1 }
 0x9f7   :  { %2261 = vsyncpa [#allocation24], 1 }
 0x9f8   :  { %2262 = vsyncpa [#allocation27], 1 }
 0x9f9   :  { %2263 = vsyncpa [#allocation4], 1 }

</bundles_post_ra>
